<compile_context>
chip_gen: v7x
topology: tpu7x:2x2x1
jax: 0.10.0
libtpu: 0.0.40
codegen_flags: <defaults>
</compile_context>

<pallas_src>
import numpy as np
import jax
import jax.numpy as jnp
from jax.experimental import pallas as pl
from jax.experimental.pallas import tpu as pltpu


# ---------------------------------------------------------------------------
# Host-side helpers (run once, outside the kernel)
# ---------------------------------------------------------------------------
def _make_tap_masks(H, W, Lb):
    """(8, Lb) fp32 0/1 masks for the 8 non-center 3x3 taps (zero padding)."""
    HW = H * W
    lane = np.arange(Lb)
    pos = lane % HW                      # position inside its own image
    hh = pos // W
    ww = pos % W
    rows = []
    for dh in (-1, 0, 1):
        for dw in (-1, 0, 1):
            if (dh, dw) == (0, 0):
                continue
            ok = ((hh + dh >= 0) & (hh + dh < H) &
                  (ww + dw >= 0) & (ww + dw < W))
            rows.append(ok.astype(np.float32))
    return jnp.asarray(np.stack(rows, axis=0))


# ---------------------------------------------------------------------------
# Fused Pallas kernel
# ---------------------------------------------------------------------------
def _make_inception_a_res_kernel(*, W, Lb, b1, b2_n1, b2_n3, b3_n1,
                                 b3_n3_1, b3_n3_2, n1, M, has_sc):
    TAPS = [(dh, dw) for dh in (-1, 0, 1) for dw in (-1, 0, 1)]

    # Static row offsets into the packed bias array.
    o_2b = M
    o_3b = o_2b + b2_n3
    o_3c = o_3b + b3_n3_1
    o_l = o_3c + b3_n3_2

    def kernel(x_ref, m_ref, w_in_ref, b_ref, w2b_ref, w3b_ref, w3c_ref,
               wl_ref, o_ref):
        x_f = x_ref[...].astype(jnp.float32)      # (Cin, Lb) fp32
        x_b = x_f.astype(jnp.bfloat16)            # bf16 matmul operand
        m_all = m_ref[...]                        # (8, Lb) fp32 halo masks
        b_all = b_ref[...]                        # (B_total, 1) fp32 biases

        def stack_taps(a):
            """(C, Lb) fp32 -> (9*C, Lb) bf16 of rolled+masked tap copies."""
            parts = []
            mi = 0
            for dh, dw in TAPS:
                s = dh * W + dw
                v = a
                if s != 0:
                    # v[:, j] <- a[:, j + s]  (lane rotation on the XLU)
                    v = pltpu.roll(v, shift=(-s) % Lb, axis=1)
                if (dh, dw) != (0, 0):
                    v = v * m_all[mi:mi + 1, :]   # zero-padding at edges
                    mi += 1
                parts.append(v)
            return jnp.concatenate(parts, axis=0).astype(jnp.bfloat16)

        # --- all branch-entry 1x1 convs (+ shortcut 1x1+BN): ONE matmul ------
        y_in = (jnp.dot(w_in_ref[...], x_b, preferred_element_type=jnp.float32)
                + b_all[0:M])
        out1 = jnp.maximum(y_in[0:b1], 0.0)
        t2 = jnp.maximum(y_in[b1:b1 + b2_n1], 0.0)
        t3 = jnp.maximum(y_in[b1 + b2_n1:b1 + b2_n1 + b3_n1], 0.0)
        if has_sc:
            sc = y_in[b1 + b2_n1 + b3_n1:M]       # conv + BN, no ReLU
        else:
            sc = x_f                               # identity shortcut

        # --- branch2: 3x3 conv = ONE (b2_n3, 9*b2_n1) @ (9*b2_n1, Lb) dot ----
        out2 = jnp.maximum(
            jnp.dot(w2b_ref[...], stack_taps(t2),
                    preferred_element_type=jnp.float32)
            + b_all[o_2b:o_2b + b2_n3], 0.0)

        # --- branch3: 3x3 -> 3x3, each as one stacked-tap matmul -------------
        u3 = jnp.maximum(
            jnp.dot(w3b_ref[...], stack_taps(t3),
                    preferred_element_type=jnp.float32)
            + b_all[o_3b:o_3b + b3_n3_1], 0.0)
        out3 = jnp.maximum(
            jnp.dot(w3c_ref[...], stack_taps(u3),
                    preferred_element_type=jnp.float32)
            + b_all[o_3c:o_3c + b3_n3_2], 0.0)

        # --- conv_linear over the channel concat: ONE matmul (K = c_cat) -----
        cat = jnp.concatenate([out1, out2, out3], axis=0).astype(jnp.bfloat16)
        lin = (jnp.dot(wl_ref[...], cat, preferred_element_type=jnp.float32)
               + b_all[o_l:o_l + n1])

        o_ref[...] = jnp.maximum(lin + sc, 0.0).astype(o_ref.dtype)

    return kernel


# ---------------------------------------------------------------------------
# Wrapper: a single pallas_call; batch folded into the lane axis
# ---------------------------------------------------------------------------
def inception_a_res_forward(x_nchw, fp, num_blocks=1):
    N, Cin, H, W = x_nchw.shape
    HW = H * W
    L = N * HW
    assert N % num_blocks == 0, "num_blocks must divide the batch size"
    Lb = (N // num_blocks) * HW           # lane width per grid block

    # (N, C, H, W) -> (C, N*H*W).  Lane order is (image, h, w)-major, so
    # per-image positions are contiguous and masks from (lane % HW) are exact.
    xf = jnp.transpose(x_nchw, (1, 0, 2, 3)).reshape(Cin, L)

    w_in, b_all = fp["w_in"], fp["b_all"]
    w2b, w3b, w3c, wl = fp["w2b"], fp["w3b"], fp["w3c"], fp["wl"]

    # Static channel split derived from the fused weight shapes.
    M = w_in.shape[0]
    b2_n3, b2_n1 = w2b.shape[0], w2b.shape[1] // 9
    b3_n3_1, b3_n1 = w3b.shape[0], w3b.shape[1] // 9
    b3_n3_2 = w3c.shape[0]
    n1, c_cat = wl.shape
    b1 = c_cat - b2_n3 - b3_n3_2
    has_sc = (M == b1 + b2_n1 + b3_n1 + n1)

    masks = _make_tap_masks(H, W, Lb)

    kernel = _make_inception_a_res_kernel(
        W=W, Lb=Lb, b1=b1, b2_n1=b2_n1, b2_n3=b2_n3, b3_n1=b3_n1,
        b3_n3_1=b3_n3_1, b3_n3_2=b3_n3_2, n1=n1, M=M, has_sc=has_sc)

    def _full(a):
        return pl.BlockSpec(a.shape, lambda g: (0,) * a.ndim)

    out = pl.pallas_call(
        kernel,
        out_shape=jax.ShapeDtypeStruct((n1, L), x_nchw.dtype),
        grid=(num_blocks,),
        in_specs=[
            pl.BlockSpec((Cin, Lb), lambda g: (0, g)),   # x (lane-split)
            _full(masks), _full(w_in), _full(b_all),
            _full(w2b), _full(w3b), _full(w3c), _full(wl),
        ],
        out_specs=pl.BlockSpec((n1, Lb), lambda g: (0, g)),
        compiler_params=pltpu.CompilerParams(
            dimension_semantics=("parallel",)),
    )(xf, masks, w_in, b_all, w2b, w3b, w3c, wl)

    return out.reshape(n1, N, H, W).transpose(1, 0, 2, 3)


# ---------------------------------------------------------------------------
# Parameter prep: per-conv (BN-folded, bf16) weights + one-time fusion
# ---------------------------------------------------------------------------
def _init_conv_bn(key, cin, cout, ksize):
    k1, k2, k3, k4, k5 = jax.random.split(key, 5)
    if ksize == 1:
        w = 0.1 * jax.random.normal(k1, (cout, cin), jnp.float32)
    else:
        w = 0.1 * jax.random.normal(k1, (ksize * ksize, cout, cin), jnp.float32)
    gamma = 1.0 + 0.1 * jax.random.normal(k2, (cout,), jnp.float32)
    beta = 0.1 * jax.random.normal(k3, (cout,), jnp.float32)
    mean = 0.1 * jax.random.normal(k4, (cout,), jnp.float32)
    var = jnp.abs(jax.random.normal(k5, (cout,), jnp.float32)) + 0.5
    scale = gamma / jnp.sqrt(var + 1e-5)
    bias = beta - mean * scale
    w_f = w * (scale[:, None] if ksize == 1 else scale[None, :, None])
    return w_f.astype(jnp.bfloat16), bias.reshape(cout, 1)   # bias stays fp32


def _init_conv_bias(key, cin, cout):
    k1, k2 = jax.random.split(key)
    w = 0.1 * jax.random.normal(k1, (cout, cin), jnp.float32)
    b = 0.1 * jax.random.normal(k2, (cout,), jnp.float32)
    return w.astype(jnp.bfloat16), b.reshape(cout, 1)


def make_params(key, cfg):
    ks = jax.random.split(key, 8)
    C = cfg["in_channels"]
    p = {
        "b1": _init_conv_bn(ks[0], C, cfg["b1"], 1),
        "b2": (_init_conv_bn(ks[1], C, cfg["b2_n1"], 1),
               _init_conv_bn(ks[2], cfg["b2_n1"], cfg["b2_n3"], 3)),
        "b3": (_init_conv_bn(ks[3], C, cfg["b3_n1"], 1),
               _init_conv_bn(ks[4], cfg["b3_n1"], cfg["b3_n3_1"], 3),
               _init_conv_bn(ks[5], cfg["b3_n3_1"], cfg["b3_n3_2"], 3)),
        "lin": _init_conv_bias(ks[6],
                               cfg["b1"] + cfg["b2_n3"] + cfg["b3_n3_2"],
                               cfg["n1_linear"]),
    }
    if C != cfg["n1_linear"]:
        p["shortcut"] = _init_conv_bn(ks[7], C, cfg["n1_linear"], 1)
    return p


def fuse_params(params):
    """One-time host-side fusion into kernel-ready bf16 weights / packed bias."""
    has_sc = "shortcut" in params
    w1, bb1 = params["b1"]
    (w2a, b2a), (w2b, b2b) = params["b2"]
    (w3a, b3a), (w3b, b3b), (w3c, b3c) = params["b3"]
    wl, bl = params["lin"]

    w_list, b_list = [w1, w2a, w3a], [bb1, b2a, b3a]
    if has_sc:
        ws, bs = params["shortcut"]
        w_list.append(ws)
        b_list.append(bs)
    w_in = jnp.concatenate(w_list, axis=0)            # (M, Cin) bf16
    b_in = jnp.concatenate(b_list, axis=0)            # (M, 1) fp32

    def flat3(w):   # (9, Cout, Cin) -> (Cout, 9*Cin), tap-major columns
        return jnp.transpose(w, (1, 0, 2)).reshape(w.shape[1], 9 * w.shape[2])

    b_all = jnp.concatenate([b_in, b2b, b3b, b3c, bl], axis=0)  # packed biases
    return {"w_in": w_in, "b_all": b_all,
            "w2b": flat3(w2b), "w3b": flat3(w3b), "w3c": flat3(w3c),
            "wl": wl}


# ---------------------------------------------------------------------------
# Pure-JAX reference (fp32 math on the same bf16-rounded weights)
# ---------------------------------------------------------------------------
def reference_forward(x_nchw, params):
    x = jnp.transpose(x_nchw, (0, 2, 3, 1))  # NHWC

    def conv(x, w_hwio, pad):
        return jax.lax.conv_general_dilated(
            x, w_hwio, (1, 1), pad, dimension_numbers=("NHWC", "HWIO", "NHWC"))

    def to_hwio_1x1(w):   # (Cout, Cin) -> (1,1,Cin,Cout)
        return jnp.transpose(w.astype(jnp.float32), (1, 0))[None, None]

    def to_hwio_3x3(w):   # (9, Cout, Cin) -> (3,3,Cin,Cout)
        w = w.astype(jnp.float32)
        return jnp.transpose(w.reshape(3, 3, w.shape[1], w.shape[2]),
                             (0, 1, 3, 2))

    def cbr1(x, p):
        w, b = p
        return jnp.maximum(conv(x, to_hwio_1x1(w), ((0, 0), (0, 0))) + b[:, 0],
                           0.0)

    def cbr3(x, p):
        w, b = p
        return jnp.maximum(conv(x, to_hwio_3x3(w), ((1, 1), (1, 1))) + b[:, 0],
                           0.0)

    out1 = cbr1(x, params["b1"])
    out2 = cbr3(cbr1(x, params["b2"][0]), params["b2"][1])
    out3 = cbr3(cbr3(cbr1(x, params["b3"][0]), params["b3"][1]),
                params["b3"][2])
    cat = jnp.concatenate([out1, out2, out3], axis=-1)

    wl, bl = params["lin"]
    lin = conv(cat, to_hwio_1x1(wl), ((0, 0), (0, 0))) + bl[:, 0]

    if "shortcut" in params:
        ws, bs = params["shortcut"]
        sc = conv(x, to_hwio_1x1(ws), ((0, 0), (0, 0))) + bs[:, 0]
    else:
        sc = x
    out = jnp.maximum(lin + sc, 0.0)
    return jnp.transpose(out, (0, 3, 1, 2))


# ---------------------------------------------------------------------------
if __name__ == "__main__":
    cfg = dict(in_channels=16, b1=8, b2_n1=8, b2_n3=16,
               b3_n1=8, b3_n3_1=16, b3_n3_2=16, n1_linear=32)

    key = jax.random.PRNGKey(0)
    kx, kp = jax.random.split(key)
    x = jax.random.normal(kx, (2, cfg["in_channels"], 16, 16), jnp.float32)  # NCHW
    params = make_params(kp, cfg)
    fparams = fuse_params(params)     # one-time host-side weight fusion

    fwd = jax.jit(inception_a_res_forward)
    out = jax.block_until_ready(fwd(x, fparams))

    ref = reference_forward(x, params)
    assert out.shape == ref.shape == (2, cfg["n1_linear"], 16, 16)
    # bf16 matmul operands in the kernel (fp32 accumulate) -> loosened tolerance.
    np.testing.assert_allclose(np.asarray(out), np.asarray(ref),
                               rtol=3e-2, atol=3e-2)

    print("KERNEL_OK")
</pallas_src>

<mosaic_0001>
module attributes {stable_mosaic.version = 11 : i64} {
  func.func @kernel(%arg0: i32, %arg1: memref<16x512xf32, #tpu.memory_space<vmem>>, %arg2: memref<8x512xf32, #tpu.memory_space<vmem>>, %arg3: memref<56x16xbf16, #tpu.memory_space<vmem>>, %arg4: memref<136x1xf32, #tpu.memory_space<vmem>>, %arg5: memref<16x72xbf16, #tpu.memory_space<vmem>>, %arg6: memref<16x72xbf16, #tpu.memory_space<vmem>>, %arg7: memref<16x144xbf16, #tpu.memory_space<vmem>>, %arg8: memref<32x40xbf16, #tpu.memory_space<vmem>>, %arg9: memref<32x512xf32, #tpu.memory_space<vmem>>) attributes {dimension_semantics = [#tpu.dimension_semantics<parallel>], iteration_bounds = array<i64: 1>, scalar_prefetch = 0 : i64, scratch_operands = 0 : i64, tpu.core_type = #tpu.core_type<tc>, window_params = [{transform_indices = @transform_0, window_bounds = array<i64: 16, 512>}, {pipeline_mode = #tpu.pipeline_mode<synchronous>, transform_indices = @transform_1, window_bounds = array<i64: 8, 512>}, {pipeline_mode = #tpu.pipeline_mode<synchronous>, transform_indices = @transform_2, window_bounds = array<i64: 56, 16>}, {pipeline_mode = #tpu.pipeline_mode<synchronous>, transform_indices = @transform_3, window_bounds = array<i64: 136, 1>}, {pipeline_mode = #tpu.pipeline_mode<synchronous>, transform_indices = @transform_4, window_bounds = array<i64: 16, 72>}, {pipeline_mode = #tpu.pipeline_mode<synchronous>, transform_indices = @transform_5, window_bounds = array<i64: 16, 72>}, {pipeline_mode = #tpu.pipeline_mode<synchronous>, transform_indices = @transform_6, window_bounds = array<i64: 16, 144>}, {pipeline_mode = #tpu.pipeline_mode<synchronous>, transform_indices = @transform_7, window_bounds = array<i64: 32, 40>}, {transform_indices = @transform_8, window_bounds = array<i64: 32, 512>}]} {
    %c0 = arith.constant 0 : index
    %c0_0 = arith.constant 0 : index
    %0 = vector.load %arg1[%c0, %c0_0] : memref<16x512xf32, #tpu.memory_space<vmem>>, vector<16x512xf32>
    %1 = arith.truncf %0 : vector<16x512xf32> to vector<16x512xbf16>
    %c0_1 = arith.constant 0 : index
    %c0_2 = arith.constant 0 : index
    %2 = vector.load %arg2[%c0_1, %c0_2] : memref<8x512xf32, #tpu.memory_space<vmem>>, vector<8x512xf32>
    %c0_3 = arith.constant 0 : index
    %c0_4 = arith.constant 0 : index
    %3 = vector.load %arg4[%c0_3, %c0_4] : memref<136x1xf32, #tpu.memory_space<vmem>>, vector<136x1xf32>
    %c0_5 = arith.constant 0 : index
    %c0_6 = arith.constant 0 : index
    %4 = vector.load %arg3[%c0_5, %c0_6] : memref<56x16xbf16, #tpu.memory_space<vmem>>, vector<56x16xbf16>
    %cst = arith.constant dense<0.000000e+00> : vector<56x512xf32>
    %5 = tpu.matmul %4, %1, %cst {dimension_numbers = #tpu.dot_dimension_numbers<[1], [0], [0], [1], [0, 0, 1, 1], [], []>} : vector<56x16xbf16>, vector<16x512xbf16>, vector<56x512xf32> -> vector<56x512xf32>
    %6 = vector.extract_strided_slice %3 {offsets = [0, 0], sizes = [56, 1], strides = [1, 1]} : vector<136x1xf32> to vector<56x1xf32>
    %7 = vector.broadcast %6 : vector<56x1xf32> to vector<56x512xf32>
    %8 = arith.addf %5, %7 : vector<56x512xf32>
    %9 = vector.extract_strided_slice %8 {offsets = [0, 0], sizes = [8, 512], strides = [1, 1]} : vector<56x512xf32> to vector<8x512xf32>
    %cst_7 = arith.constant 0.000000e+00 : f32
    %10 = vector.broadcast %cst_7 : f32 to vector<8x512xf32>
    %11 = arith.maximumf %9, %10 : vector<8x512xf32>
    %12 = vector.extract_strided_slice %8 {offsets = [8, 0], sizes = [8, 512], strides = [1, 1]} : vector<56x512xf32> to vector<8x512xf32>
    %cst_8 = arith.constant 0.000000e+00 : f32
    %13 = vector.broadcast %cst_8 : f32 to vector<8x512xf32>
    %14 = arith.maximumf %12, %13 : vector<8x512xf32>
    %15 = vector.extract_strided_slice %8 {offsets = [16, 0], sizes = [8, 512], strides = [1, 1]} : vector<56x512xf32> to vector<8x512xf32>
    %cst_9 = arith.constant 0.000000e+00 : f32
    %16 = vector.broadcast %cst_9 : f32 to vector<8x512xf32>
    %17 = arith.maximumf %15, %16 : vector<8x512xf32>
    %18 = vector.extract_strided_slice %8 {offsets = [24, 0], sizes = [32, 512], strides = [1, 1]} : vector<56x512xf32> to vector<32x512xf32>
    %c0_10 = arith.constant 0 : index
    %c0_11 = arith.constant 0 : index
    %19 = vector.load %arg5[%c0_10, %c0_11] : memref<16x72xbf16, #tpu.memory_space<vmem>>, vector<16x72xbf16>
    %c17_i32 = arith.constant 17 : i32
    %20 = tpu.dynamic_rotate %14 by %c17_i32 dim 1 : vector<8x512xf32>, i32 -> vector<8x512xf32>
    %21 = vector.extract_strided_slice %2 {offsets = [0, 0], sizes = [1, 512], strides = [1, 1]} : vector<8x512xf32> to vector<1x512xf32>
    %22 = vector.broadcast %21 : vector<1x512xf32> to vector<8x512xf32>
    %23 = arith.mulf %20, %22 : vector<8x512xf32>
    %c16_i32 = arith.constant 16 : i32
    %24 = tpu.dynamic_rotate %14 by %c16_i32 dim 1 : vector<8x512xf32>, i32 -> vector<8x512xf32>
    %25 = vector.extract_strided_slice %2 {offsets = [1, 0], sizes = [1, 512], strides = [1, 1]} : vector<8x512xf32> to vector<1x512xf32>
    %26 = vector.broadcast %25 : vector<1x512xf32> to vector<8x512xf32>
    %27 = arith.mulf %24, %26 : vector<8x512xf32>
    %c15_i32 = arith.constant 15 : i32
    %28 = tpu.dynamic_rotate %14 by %c15_i32 dim 1 : vector<8x512xf32>, i32 -> vector<8x512xf32>
    %29 = vector.extract_strided_slice %2 {offsets = [2, 0], sizes = [1, 512], strides = [1, 1]} : vector<8x512xf32> to vector<1x512xf32>
    %30 = vector.broadcast %29 : vector<1x512xf32> to vector<8x512xf32>
    %31 = arith.mulf %28, %30 : vector<8x512xf32>
    %c1_i32 = arith.constant 1 : i32
    %32 = tpu.dynamic_rotate %14 by %c1_i32 dim 1 : vector<8x512xf32>, i32 -> vector<8x512xf32>
    %33 = vector.extract_strided_slice %2 {offsets = [3, 0], sizes = [1, 512], strides = [1, 1]} : vector<8x512xf32> to vector<1x512xf32>
    %34 = vector.broadcast %33 : vector<1x512xf32> to vector<8x512xf32>
    %35 = arith.mulf %32, %34 : vector<8x512xf32>
    %c511_i32 = arith.constant 511 : i32
    %36 = tpu.dynamic_rotate %14 by %c511_i32 dim 1 : vector<8x512xf32>, i32 -> vector<8x512xf32>
    %37 = vector.extract_strided_slice %2 {offsets = [4, 0], sizes = [1, 512], strides = [1, 1]} : vector<8x512xf32> to vector<1x512xf32>
    %38 = vector.broadcast %37 : vector<1x512xf32> to vector<8x512xf32>
    %39 = arith.mulf %36, %38 : vector<8x512xf32>
    %c497_i32 = arith.constant 497 : i32
    %40 = tpu.dynamic_rotate %14 by %c497_i32 dim 1 : vector<8x512xf32>, i32 -> vector<8x512xf32>
    %41 = vector.extract_strided_slice %2 {offsets = [5, 0], sizes = [1, 512], strides = [1, 1]} : vector<8x512xf32> to vector<1x512xf32>
    %42 = vector.broadcast %41 : vector<1x512xf32> to vector<8x512xf32>
    %43 = arith.mulf %40, %42 : vector<8x512xf32>
    %c496_i32 = arith.constant 496 : i32
    %44 = tpu.dynamic_rotate %14 by %c496_i32 dim 1 : vector<8x512xf32>, i32 -> vector<8x512xf32>
    %45 = vector.extract_strided_slice %2 {offsets = [6, 0], sizes = [1, 512], strides = [1, 1]} : vector<8x512xf32> to vector<1x512xf32>
    %46 = vector.broadcast %45 : vector<1x512xf32> to vector<8x512xf32>
    %47 = arith.mulf %44, %46 : vector<8x512xf32>
    %c495_i32 = arith.constant 495 : i32
    %48 = tpu.dynamic_rotate %14 by %c495_i32 dim 1 : vector<8x512xf32>, i32 -> vector<8x512xf32>
    %49 = vector.extract_strided_slice %2 {offsets = [7, 0], sizes = [1, 512], strides = [1, 1]} : vector<8x512xf32> to vector<1x512xf32>
    %50 = vector.broadcast %49 : vector<1x512xf32> to vector<8x512xf32>
    %51 = arith.mulf %48, %50 : vector<8x512xf32>
    %52 = tpu.concatenate %23, %27, %31, %35, %14, %39, %43, %47, %51 in 0 : vector<8x512xf32>, vector<8x512xf32>, vector<8x512xf32>, vector<8x512xf32>, vector<8x512xf32>, vector<8x512xf32>, vector<8x512xf32>, vector<8x512xf32>, vector<8x512xf32> -> vector<72x512xf32>
    %53 = arith.truncf %52 : vector<72x512xf32> to vector<72x512xbf16>
    %cst_12 = arith.constant dense<0.000000e+00> : vector<16x512xf32>
    %54 = tpu.matmul %19, %53, %cst_12 {dimension_numbers = #tpu.dot_dimension_numbers<[1], [0], [0], [1], [0, 0, 1, 1], [], []>} : vector<16x72xbf16>, vector<72x512xbf16>, vector<16x512xf32> -> vector<16x512xf32>
    %55 = vector.extract_strided_slice %3 {offsets = [56, 0], sizes = [16, 1], strides = [1, 1]} : vector<136x1xf32> to vector<16x1xf32>
    %56 = vector.broadcast %55 : vector<16x1xf32> to vector<16x512xf32>
    %57 = arith.addf %54, %56 : vector<16x512xf32>
    %cst_13 = arith.constant 0.000000e+00 : f32
    %58 = vector.broadcast %cst_13 : f32 to vector<16x512xf32>
    %59 = arith.maximumf %57, %58 : vector<16x512xf32>
    %c0_14 = arith.constant 0 : index
    %c0_15 = arith.constant 0 : index
    %60 = vector.load %arg6[%c0_14, %c0_15] : memref<16x72xbf16, #tpu.memory_space<vmem>>, vector<16x72xbf16>
    %c17_i32_16 = arith.constant 17 : i32
    %61 = tpu.dynamic_rotate %17 by %c17_i32_16 dim 1 : vector<8x512xf32>, i32 -> vector<8x512xf32>
    %62 = vector.extract_strided_slice %2 {offsets = [0, 0], sizes = [1, 512], strides = [1, 1]} : vector<8x512xf32> to vector<1x512xf32>
    %63 = vector.broadcast %62 : vector<1x512xf32> to vector<8x512xf32>
    %64 = arith.mulf %61, %63 : vector<8x512xf32>
    %c16_i32_17 = arith.constant 16 : i32
    %65 = tpu.dynamic_rotate %17 by %c16_i32_17 dim 1 : vector<8x512xf32>, i32 -> vector<8x512xf32>
    %66 = vector.extract_strided_slice %2 {offsets = [1, 0], sizes = [1, 512], strides = [1, 1]} : vector<8x512xf32> to vector<1x512xf32>
    %67 = vector.broadcast %66 : vector<1x512xf32> to vector<8x512xf32>
    %68 = arith.mulf %65, %67 : vector<8x512xf32>
    %c15_i32_18 = arith.constant 15 : i32
    %69 = tpu.dynamic_rotate %17 by %c15_i32_18 dim 1 : vector<8x512xf32>, i32 -> vector<8x512xf32>
    %70 = vector.extract_strided_slice %2 {offsets = [2, 0], sizes = [1, 512], strides = [1, 1]} : vector<8x512xf32> to vector<1x512xf32>
    %71 = vector.broadcast %70 : vector<1x512xf32> to vector<8x512xf32>
    %72 = arith.mulf %69, %71 : vector<8x512xf32>
    %c1_i32_19 = arith.constant 1 : i32
    %73 = tpu.dynamic_rotate %17 by %c1_i32_19 dim 1 : vector<8x512xf32>, i32 -> vector<8x512xf32>
    %74 = vector.extract_strided_slice %2 {offsets = [3, 0], sizes = [1, 512], strides = [1, 1]} : vector<8x512xf32> to vector<1x512xf32>
    %75 = vector.broadcast %74 : vector<1x512xf32> to vector<8x512xf32>
    %76 = arith.mulf %73, %75 : vector<8x512xf32>
    %c511_i32_20 = arith.constant 511 : i32
    %77 = tpu.dynamic_rotate %17 by %c511_i32_20 dim 1 : vector<8x512xf32>, i32 -> vector<8x512xf32>
    %78 = vector.extract_strided_slice %2 {offsets = [4, 0], sizes = [1, 512], strides = [1, 1]} : vector<8x512xf32> to vector<1x512xf32>
    %79 = vector.broadcast %78 : vector<1x512xf32> to vector<8x512xf32>
    %80 = arith.mulf %77, %79 : vector<8x512xf32>
    %c497_i32_21 = arith.constant 497 : i32
    %81 = tpu.dynamic_rotate %17 by %c497_i32_21 dim 1 : vector<8x512xf32>, i32 -> vector<8x512xf32>
    %82 = vector.extract_strided_slice %2 {offsets = [5, 0], sizes = [1, 512], strides = [1, 1]} : vector<8x512xf32> to vector<1x512xf32>
    %83 = vector.broadcast %82 : vector<1x512xf32> to vector<8x512xf32>
    %84 = arith.mulf %81, %83 : vector<8x512xf32>
    %c496_i32_22 = arith.constant 496 : i32
    %85 = tpu.dynamic_rotate %17 by %c496_i32_22 dim 1 : vector<8x512xf32>, i32 -> vector<8x512xf32>
    %86 = vector.extract_strided_slice %2 {offsets = [6, 0], sizes = [1, 512], strides = [1, 1]} : vector<8x512xf32> to vector<1x512xf32>
    %87 = vector.broadcast %86 : vector<1x512xf32> to vector<8x512xf32>
    %88 = arith.mulf %85, %87 : vector<8x512xf32>
    %c495_i32_23 = arith.constant 495 : i32
    %89 = tpu.dynamic_rotate %17 by %c495_i32_23 dim 1 : vector<8x512xf32>, i32 -> vector<8x512xf32>
    %90 = vector.extract_strided_slice %2 {offsets = [7, 0], sizes = [1, 512], strides = [1, 1]} : vector<8x512xf32> to vector<1x512xf32>
    %91 = vector.broadcast %90 : vector<1x512xf32> to vector<8x512xf32>
    %92 = arith.mulf %89, %91 : vector<8x512xf32>
    %93 = tpu.concatenate %64, %68, %72, %76, %17, %80, %84, %88, %92 in 0 : vector<8x512xf32>, vector<8x512xf32>, vector<8x512xf32>, vector<8x512xf32>, vector<8x512xf32>, vector<8x512xf32>, vector<8x512xf32>, vector<8x512xf32>, vector<8x512xf32> -> vector<72x512xf32>
    %94 = arith.truncf %93 : vector<72x512xf32> to vector<72x512xbf16>
    %cst_24 = arith.constant dense<0.000000e+00> : vector<16x512xf32>
    %95 = tpu.matmul %60, %94, %cst_24 {dimension_numbers = #tpu.dot_dimension_numbers<[1], [0], [0], [1], [0, 0, 1, 1], [], []>} : vector<16x72xbf16>, vector<72x512xbf16>, vector<16x512xf32> -> vector<16x512xf32>
    %96 = vector.extract_strided_slice %3 {offsets = [72, 0], sizes = [16, 1], strides = [1, 1]} : vector<136x1xf32> to vector<16x1xf32>
    %97 = vector.broadcast %96 : vector<16x1xf32> to vector<16x512xf32>
    %98 = arith.addf %95, %97 : vector<16x512xf32>
    %cst_25 = arith.constant 0.000000e+00 : f32
    %99 = vector.broadcast %cst_25 : f32 to vector<16x512xf32>
    %100 = arith.maximumf %98, %99 : vector<16x512xf32>
    %c0_26 = arith.constant 0 : index
    %c0_27 = arith.constant 0 : index
    %101 = vector.load %arg7[%c0_26, %c0_27] : memref<16x144xbf16, #tpu.memory_space<vmem>>, vector<16x144xbf16>
    %c17_i32_28 = arith.constant 17 : i32
    %102 = tpu.dynamic_rotate %100 by %c17_i32_28 dim 1 : vector<16x512xf32>, i32 -> vector<16x512xf32>
    %103 = vector.extract_strided_slice %2 {offsets = [0, 0], sizes = [1, 512], strides = [1, 1]} : vector<8x512xf32> to vector<1x512xf32>
    %104 = vector.broadcast %103 : vector<1x512xf32> to vector<16x512xf32>
    %105 = arith.mulf %102, %104 : vector<16x512xf32>
    %c16_i32_29 = arith.constant 16 : i32
    %106 = tpu.dynamic_rotate %100 by %c16_i32_29 dim 1 : vector<16x512xf32>, i32 -> vector<16x512xf32>
    %107 = vector.extract_strided_slice %2 {offsets = [1, 0], sizes = [1, 512], strides = [1, 1]} : vector<8x512xf32> to vector<1x512xf32>
    %108 = vector.broadcast %107 : vector<1x512xf32> to vector<16x512xf32>
    %109 = arith.mulf %106, %108 : vector<16x512xf32>
    %c15_i32_30 = arith.constant 15 : i32
    %110 = tpu.dynamic_rotate %100 by %c15_i32_30 dim 1 : vector<16x512xf32>, i32 -> vector<16x512xf32>
    %111 = vector.extract_strided_slice %2 {offsets = [2, 0], sizes = [1, 512], strides = [1, 1]} : vector<8x512xf32> to vector<1x512xf32>
    %112 = vector.broadcast %111 : vector<1x512xf32> to vector<16x512xf32>
    %113 = arith.mulf %110, %112 : vector<16x512xf32>
    %c1_i32_31 = arith.constant 1 : i32
    %114 = tpu.dynamic_rotate %100 by %c1_i32_31 dim 1 : vector<16x512xf32>, i32 -> vector<16x512xf32>
    %115 = vector.extract_strided_slice %2 {offsets = [3, 0], sizes = [1, 512], strides = [1, 1]} : vector<8x512xf32> to vector<1x512xf32>
    %116 = vector.broadcast %115 : vector<1x512xf32> to vector<16x512xf32>
    %117 = arith.mulf %114, %116 : vector<16x512xf32>
    %c511_i32_32 = arith.constant 511 : i32
    %118 = tpu.dynamic_rotate %100 by %c511_i32_32 dim 1 : vector<16x512xf32>, i32 -> vector<16x512xf32>
    %119 = vector.extract_strided_slice %2 {offsets = [4, 0], sizes = [1, 512], strides = [1, 1]} : vector<8x512xf32> to vector<1x512xf32>
    %120 = vector.broadcast %119 : vector<1x512xf32> to vector<16x512xf32>
    %121 = arith.mulf %118, %120 : vector<16x512xf32>
    %c497_i32_33 = arith.constant 497 : i32
    %122 = tpu.dynamic_rotate %100 by %c497_i32_33 dim 1 : vector<16x512xf32>, i32 -> vector<16x512xf32>
    %123 = vector.extract_strided_slice %2 {offsets = [5, 0], sizes = [1, 512], strides = [1, 1]} : vector<8x512xf32> to vector<1x512xf32>
    %124 = vector.broadcast %123 : vector<1x512xf32> to vector<16x512xf32>
    %125 = arith.mulf %122, %124 : vector<16x512xf32>
    %c496_i32_34 = arith.constant 496 : i32
    %126 = tpu.dynamic_rotate %100 by %c496_i32_34 dim 1 : vector<16x512xf32>, i32 -> vector<16x512xf32>
    %127 = vector.extract_strided_slice %2 {offsets = [6, 0], sizes = [1, 512], strides = [1, 1]} : vector<8x512xf32> to vector<1x512xf32>
    %128 = vector.broadcast %127 : vector<1x512xf32> to vector<16x512xf32>
    %129 = arith.mulf %126, %128 : vector<16x512xf32>
    %c495_i32_35 = arith.constant 495 : i32
    %130 = tpu.dynamic_rotate %100 by %c495_i32_35 dim 1 : vector<16x512xf32>, i32 -> vector<16x512xf32>
    %131 = vector.extract_strided_slice %2 {offsets = [7, 0], sizes = [1, 512], strides = [1, 1]} : vector<8x512xf32> to vector<1x512xf32>
    %132 = vector.broadcast %131 : vector<1x512xf32> to vector<16x512xf32>
    %133 = arith.mulf %130, %132 : vector<16x512xf32>
    %134 = tpu.concatenate %105, %109, %113, %117, %100, %121, %125, %129, %133 in 0 : vector<16x512xf32>, vector<16x512xf32>, vector<16x512xf32>, vector<16x512xf32>, vector<16x512xf32>, vector<16x512xf32>, vector<16x512xf32>, vector<16x512xf32>, vector<16x512xf32> -> vector<144x512xf32>
    %135 = arith.truncf %134 : vector<144x512xf32> to vector<144x512xbf16>
    %cst_36 = arith.constant dense<0.000000e+00> : vector<16x512xf32>
    %136 = tpu.matmul %101, %135, %cst_36 {dimension_numbers = #tpu.dot_dimension_numbers<[1], [0], [0], [1], [0, 0, 1, 1], [], []>} : vector<16x144xbf16>, vector<144x512xbf16>, vector<16x512xf32> -> vector<16x512xf32>
    %137 = vector.extract_strided_slice %3 {offsets = [88, 0], sizes = [16, 1], strides = [1, 1]} : vector<136x1xf32> to vector<16x1xf32>
    %138 = vector.broadcast %137 : vector<16x1xf32> to vector<16x512xf32>
    %139 = arith.addf %136, %138 : vector<16x512xf32>
    %cst_37 = arith.constant 0.000000e+00 : f32
    %140 = vector.broadcast %cst_37 : f32 to vector<16x512xf32>
    %141 = arith.maximumf %139, %140 : vector<16x512xf32>
    %142 = tpu.concatenate %11, %59, %141 in 0 : vector<8x512xf32>, vector<16x512xf32>, vector<16x512xf32> -> vector<40x512xf32>
    %143 = arith.truncf %142 : vector<40x512xf32> to vector<40x512xbf16>
    %c0_38 = arith.constant 0 : index
    %c0_39 = arith.constant 0 : index
    %144 = vector.load %arg8[%c0_38, %c0_39] : memref<32x40xbf16, #tpu.memory_space<vmem>>, vector<32x40xbf16>
    %cst_40 = arith.constant dense<0.000000e+00> : vector<32x512xf32>
    %145 = tpu.matmul %144, %143, %cst_40 {dimension_numbers = #tpu.dot_dimension_numbers<[1], [0], [0], [1], [0, 0, 1, 1], [], []>} : vector<32x40xbf16>, vector<40x512xbf16>, vector<32x512xf32> -> vector<32x512xf32>
    %146 = vector.extract_strided_slice %3 {offsets = [104, 0], sizes = [32, 1], strides = [1, 1]} : vector<136x1xf32> to vector<32x1xf32>
    %147 = vector.broadcast %146 : vector<32x1xf32> to vector<32x512xf32>
    %148 = arith.addf %145, %147 : vector<32x512xf32>
    %149 = arith.addf %148, %18 : vector<32x512xf32>
    %cst_41 = arith.constant 0.000000e+00 : f32
    %150 = vector.broadcast %cst_41 : f32 to vector<32x512xf32>
    %151 = arith.maximumf %149, %150 : vector<32x512xf32>
    %c0_42 = arith.constant 0 : index
    %c0_43 = arith.constant 0 : index
    %152 = vector.load %arg9[%c0_42, %c0_43] : memref<32x512xf32, #tpu.memory_space<vmem>>, vector<32x512xf32>
    tpu.vector_store %arg9[%c0_42, %c0_43], %151 {strides = array<i32>} : memref<32x512xf32, #tpu.memory_space<vmem>>, vector<32x512xf32>,
    return
  }
  func.func @transform_0(%arg0: i32) -> (i32, i32) {
    %c0_i32 = arith.constant 0 : i32
    %c0_i32_0 = arith.constant 0 : i32
    return %c0_i32, %arg0 : i32, i32
  }
  func.func @transform_1(%arg0: i32) -> (i32, i32) {
    %c0_i32 = arith.constant 0 : i32
    %c0_i32_0 = arith.constant 0 : i32
    %c0_i32_1 = arith.constant 0 : i32
    return %c0_i32, %c0_i32_0 : i32, i32
  }
  func.func @transform_2(%arg0: i32) -> (i32, i32) {
    %c0_i32 = arith.constant 0 : i32
    %c0_i32_0 = arith.constant 0 : i32
    %c0_i32_1 = arith.constant 0 : i32
    return %c0_i32, %c0_i32_0 : i32, i32
  }
  func.func @transform_3(%arg0: i32) -> (i32, i32) {
    %c0_i32 = arith.constant 0 : i32
    %c0_i32_0 = arith.constant 0 : i32
    %c0_i32_1 = arith.constant 0 : i32
    return %c0_i32, %c0_i32_0 : i32, i32
  }
  func.func @transform_4(%arg0: i32) -> (i32, i32) {
    %c0_i32 = arith.constant 0 : i32
    %c0_i32_0 = arith.constant 0 : i32
    %c0_i32_1 = arith.constant 0 : i32
    return %c0_i32, %c0_i32_0 : i32, i32
  }
  func.func @transform_5(%arg0: i32) -> (i32, i32) {
    %c0_i32 = arith.constant 0 : i32
    %c0_i32_0 = arith.constant 0 : i32
    %c0_i32_1 = arith.constant 0 : i32
    return %c0_i32, %c0_i32_0 : i32, i32
  }
  func.func @transform_6(%arg0: i32) -> (i32, i32) {
    %c0_i32 = arith.constant 0 : i32
    %c0_i32_0 = arith.constant 0 : i32
    %c0_i32_1 = arith.constant 0 : i32
    return %c0_i32, %c0_i32_0 : i32, i32
  }
  func.func @transform_7(%arg0: i32) -> (i32, i32) {
    %c0_i32 = arith.constant 0 : i32
    %c0_i32_0 = arith.constant 0 : i32
    %c0_i32_1 = arith.constant 0 : i32
    return %c0_i32, %c0_i32_0 : i32, i32
  }
  func.func @transform_8(%arg0: i32) -> (i32, i32) {
    %c0_i32 = arith.constant 0 : i32
    %c0_i32_0 = arith.constant 0 : i32
    return %c0_i32, %arg0 : i32, i32
  }
}

</mosaic_0001>

<bundles_post_ra>
// kernel: inception_a_res_forward.1
= control target key start
LH: loop header
LB: loop body
LE: loop exit
PB: predicated region body
PF: predicated region fallthrough
CT: control target
= control target key end

     0   :  { %v2981_v3 = vmov 0   ;;  %vm123_vm0 = vcmask 130048   ;;  %s1668_s28 = smov 17   ;;  %s1669_s29 = smov 16   ;;  %v300_v53 = vlaneseq  ;;  %vm597_vm9 = vcmask 1043456   ;;  %s2972_s0 = inlined_call_operand.vmem [shape: f32[16,512], index: 0, kind: input, shape index: {}]   ;;  %s2973_s2 = inlined_call_operand.vmem [shape: bf16[56,16], index: 2, kind: input, shape index: {}]   ;;  %s2974_s3 = inlined_call_operand.vmem [shape: f32[136,1], index: 3, kind: input, shape index: {}]   ;;  %s2975_s4 = inlined_call_operand.vmem [shape: bf16[16,72], index: 4, kind: input, shape index: {}]   ;;  %s2976_s1 = inlined_call_operand.vmem [shape: f32[8,512], index: 1, kind: input, shape index: {}]   ;;  %s2977_s5 = inlined_call_operand.vmem [shape: bf16[16,72], index: 5, kind: input, shape index: {}]   ;;  %s2978_s6 = inlined_call_operand.vmem [shape: bf16[16,144], index: 6, kind: input, shape index: {}]   ;;  %s2979_s7 = inlined_call_operand.vmem [shape: bf16[32,40], index: 7, kind: input, shape index: {}]   ;;  %s2980_s8 = inlined_call_operand.vmem [shape: f32[32,512], index: 8, kind: output, shape index: {}]  }
   0x1   :  { %v31_v0 = vld [vmem:[%s2972_s0 + $0x8] sm:$0xff]  ;;  %v33_v2 = vld [vmem:[%s2972_s0 + $0x18] sm:$0xff]  ;;  %168 = vmatprep.mubr.bf16.mxu0 %v2981_v3  ;;  %239 = vmatprep.mubr.bf16.mxu1 %v2981_v3  ;;  %v30_v6 = vld [vmem:[%s2972_s0] sm:$0xff]  ;;  %s1670_s30 = smov 15   ;;  %s1671_s9 = smov 1   ;;  %vm593_vm10 = vcmask 588800  }
   0x2   :  { %v35_v1 = vld [vmem:[%s2972_s0 + $0x28] sm:$0xff]  ;;  %v37_v5 = vld [vmem:[%s2972_s0 + $0x38] sm:$0xff]  ;;  %v34_v7 = vld [vmem:[%s2972_s0 + $0x20] sm:$0xff]  ;;  %1654 = vset.pattern.permute.xlu0 %v2981_v3  ;;  %1655 = vset.pattern.permute.xlu1 %v2981_v3  ;;  %s1672_s10 = smov 127   ;;  %s1673_s11 = smov 113   ;;  %v1933_v56 = vshrl.u32 %v300_v53, 7 }
   0x3   :  { %v39_v4 = vpack.c.bf16 %v35_v1, %v31_v0  ;;  %v41_v8 = vpack.c.bf16 %v37_v5, %v33_v2  ;;  %v38_v9 = vpack.c.bf16 %v34_v7, %v30_v6  ;;  %v32_v10 = vld [vmem:[%s2972_s0 + $0x10] sm:$0xff]  ;;  %v1656_v13 = vld [vmem:[%s2973_s2] sm:$0xff]   ;;  %v47_v14 = vld [vmem:[%s2974_s3 + $0x8] sm:$0xff]  ;;  %s1674_s12 = smov 112   ;;  %s1675_s13 = smov 111   ;;  %v1937_v57 = vand.u32 127, %v300_v53 }
   0x4   :  { %v36_v11 = vld [vmem:[%s2972_s0 + $0x30] sm:$0xff]  ;;  %77 = vperm.xlu0 %1654, %v47_v14   ;;  %v1657_v16 = vld [vmem:[%s2973_s2 + $0x8] sm:$0xff]   ;;  %v1659_v49 = vld [vmem:[%s2973_s2 + $0x18] ss:$0 sps:$4 sm:$0xff]   ;;  %v309_v60 = vsub.s32 0, %v1933_v56  ;;  %v342_v61 = vsub.s32 1, %v1933_v56 }
   0x5   :  { %136 = vmatprep.subr.bf16.mxu0 %v39_v4  ;;  %v40_v12 = vpack.c.bf16 %v36_v11, %v32_v10  ;;  %207 = vmatprep.subr.bf16.mxu1 %v41_v8  ;;  %v48_v15 = vld [vmem:[%s2974_s3 + $0x10] sm:$0xff]  ;;  %v1946_v62 = vld [vmem:[%s2976_s1 + $0x8] sm:$0xff]  ;;  %vm302_vm1 = vcmp.lt.s32.totalorder %v1937_v57, 17  ;;  %v1957_v2 = vld [vmem:[%s2976_s1] sm:$0xff]  ;;  %vm335_vm2 = vcmp.lt.s32.totalorder %v1937_v57, 16  ;;  %vm368_vm3 = vcmp.lt.s32.totalorder %v1937_v57, 15 }
   0x6   :  { %137 = vmatpush1.bf16.msra.mxu0 %v38_v9  ;;  %v1658_v44 = vld [vmem:[%s2973_s2 + $0x10] sm:$0xff]   ;;  %v55_v0 = vld [vmem:[%s2974_s3 + $0x48] sm:$0xff]  ;;  %v1962_v4 = vld [vmem:[%s2976_s1 + $0x18] sm:$0xff]  ;;  %v1965_v5 = vrot.slane %v1946_v62, %v309_v60  ;;  %v1971_v6 = vrot.slane %v1946_v62, %v342_v61  ;;  %v1981_v9 = vrot.slane %v1957_v2, %v309_v60  ;;  %vm401_vm4 = vcmp.lt.s32.totalorder %v1937_v57, 1 }
   0x7   :  { %208 = vmatpush1.bf16.msra.mxu1 %v40_v12  ;;  %v1978_v8 = vld [vmem:[%s2976_s1 + $0x10] sm:$0xff]  ;;  %v1984_v10 = vrot.slane %v1962_v4, %v309_v60  ;;  %vm434_vm5 = vcmp.lt.s32.totalorder %v1937_v57, 127  ;;  %vm467_vm6 = vcmp.lt.s32.totalorder %v1937_v57, 113  ;;  %vm500_vm7 = vcmp.lt.s32.totalorder %v1937_v57, 112 }
   0x8   :  { %82 = vperm.xlu0 %1654, %v48_v15   ;;  %v1992_v15 = vrot.slane %v1957_v2, %v342_v61  ;;  %vm533_vm8 = vcmp.lt.s32.totalorder %v1937_v57, 111  ;;  %v3096_v57 = vmov 0   ;;  %vm1434_vm11 = vcmask 326656  }
   0x9   :  { %1615 = vmatmul.mubr.msk.bf16.vlgmr.msra.gmra.mrb[0].mxu0 %vm123_vm0, %v1656_v13 }
   0xa   :  { %1619 = vmatmul.mubr.msk.bf16.vlgmr.msra.gmra.mrb[0].mxu1 %vm123_vm0, %v1656_v13  ;;  %178 = vmatprep.mubr.bf16.mxu0 %v2981_v3  ;;  %v1987_v13 = vrot.slane %v1978_v8, %v342_v61 }
   0xb   :  { %249 = vmatprep.mubr.bf16.mxu1 %v2981_v3 }
  0x11   :  { %1616 = vmatmul.mubr.msk.bf16.gmra.mrb[4].mxu0 %vm123_vm0, %v1657_v16 }
  0x12   :  { %1620 = vmatmul.mubr.msk.bf16.gmra.mrb[4].mxu1 %vm123_vm0, %v1657_v16  ;;  %188 = vmatprep.mubr.bf16.mxu0 %v2981_v3  ;;  %v1995_v16 = vrot.slane %v1962_v4, %v342_v61 }
  0x13   :  { %259 = vmatprep.mubr.bf16.mxu1 %v2981_v3 }
  0x19   :  { %1617 = vmatmul.mubr.msk.bf16.gmra.mrb[8].mxu0 %vm123_vm0, %v1658_v44 }
  0x1a   :  { %1621 = vmatmul.mubr.msk.bf16.gmra.mrb[8].mxu1 %vm123_vm0, %v1658_v44  ;;  %198 = vmatprep.mubr.bf16.mxu0 %v2981_v3 }
  0x1b   :  { %269 = vmatprep.mubr.bf16.mxu1 %v2981_v3 }
  0x21   :  { %1618 = vmatmul.mubr.msk.bf16.gmra.mrb[12].mxu0 %vm123_vm0, %v1659_v49 }
  0x22   :  { %1622 = vmatmul.mubr.msk.bf16.gmra.mrb[12].mxu1 %vm123_vm0, %v1659_v49  ;;  %642 = vmatprep.mubr.bf16.mxu0 %v2981_v3 }
  0x23   :  { %685 = vmatprep.mubr.bf16.mxu1 %v2981_v3 }
  0x83   :  { %v78_v17 = vpop.permute.xlu0 %77 }
  0x87   :  { %v83_v42 = vpop.permute.xlu0 %82 }
  0xdc   :  { %v1769_v18 = vpop.f32.mrb[0].mxu0 }
  0xdd   :  { %3019 = vst [vmem:[#allocation2_spill] sm:$0xff] %v1769_v18  ;;  %v1771_v19 = vpop.f32.mrb[0].mxu1  ;;  %v1773_v20 = vpop.f32.mrb[1].mxu0  ;;  %v61_v18 = vld [vmem:[%s2974_s3 + $0x78] sm:$0xff] }
  0xde   :  { %3020 = vst [vmem:[#allocation3_spill] sm:$0xff] %v1771_v19  ;;  %3021 = vst [vmem:[#allocation4_spill] sm:$0xff] %v1773_v20  ;;  %v1775_v21 = vpop.f32.mrb[1].mxu1  ;;  %v174_v22 = vpop.f32.mrb[2].mxu0  ;;  %v59_v19 = vld [vmem:[%s2974_s3 + $0x68] sm:$0xff] }
  0xdf   :  { %3022 = vst [vmem:[#allocation5_spill] sm:$0xff] %v1775_v21  ;;  %v175_v23 = vadd.f32 %v174_v22, %v78_v17  ;;  %v245_v24 = vpop.f32.mrb[2].mxu1  ;;  %v176_v25 = vpop.f32.mrb[3].mxu0 }
  0xe0   :  { %v246_v26 = vadd.f32 %v245_v24, %v78_v17  ;;  %v247_v27 = vpop.f32.mrb[3].mxu1  ;;  %v177_v29 = vadd.f32 %v176_v25, %v78_v17  ;;  %v2006_v25 = vrot.slane %v1978_v8, %v309_v60  ;;  %v375_v60 = vsub.s32 2, %v1933_v56 }
  0xe1   :  { %v1777_v28 = vmax.f32 %v175_v23, 0.0  ;;  %v248_v33 = vadd.f32 %v247_v27, %v78_v17  ;;  %v56_v27 = vld [vmem:[%s2974_s3 + $0x50] sm:$0xff] }
  0xe2   :  { %v1779_v30 = vmax.f32 %v246_v26, 0.0  ;;  %v1785_v32 = vmax.f32 %v177_v29, 0.0 }
  0xe3   :  { %292 = vrot.lane.b32.xlu1 %v1777_v28, %s1668_s28  ;;  %v1799_v41 = vmax.f32 %v248_v33, 0.0 }
  0xe4   :  { %296 = vrot.lane.b32.xlu0 %v1779_v30, %s1668_s28  ;;  %v180_v31 = vpop.f32.mrb[4].mxu0 }
  0xe5   :  { %v251_v34 = vpop.f32.mrb[4].mxu1  ;;  %v182_v35 = vpop.f32.mrb[5].mxu0  ;;  %v181_v43 = vadd.f32 %v180_v31, %v83_v42 }
  0xe6   :  { %v253_v36 = vpop.f32.mrb[5].mxu1  ;;  %v1787_v37 = vpop.f32.mrb[6].mxu0  ;;  %v252_v46 = vadd.f32 %v251_v34, %v83_v42  ;;  %v183_v47 = vadd.f32 %v182_v35, %v83_v42 }
  0xe7   :  { %3023 = vst [vmem:[#allocation6_spill] sm:$0xff] %v1787_v37  ;;  %294 = vrot.lane.b32.xlu1 %v1785_v32, %s1668_s28  ;;  %v1791_v38 = vpop.f32.mrb[7].mxu0  ;;  %v1793_v39 = vpop.f32.mrb[6].mxu1  ;;  %v1859_v45 = vmax.f32 %v181_v43, 0.0  ;;  %v254_v51 = vadd.f32 %v253_v36, %v83_v42 }
  0xe8   :  { %3024 = vst [vmem:[#allocation7_spill] sm:$0xff] %v1791_v38  ;;  %3025 = vst [vmem:[#allocation8_spill] sm:$0xff] %v1793_v39  ;;  %327 = vrot.lane.b32.xlu0 %v1777_v28, %s1669_s29  ;;  %v1797_v40 = vpop.f32.mrb[7].mxu1  ;;  %v1866_v48 = vmax.f32 %v252_v46, 0.0  ;;  %v1876_v50 = vmax.f32 %v183_v47, 0.0 }
  0xe9   :  { %3026 = vst [vmem:[#allocation9_spill] sm:$0xff] %v1797_v40  ;;  %v1885_v52 = vmax.f32 %v254_v51, 0.0 }
  0xeb   :  { %298 = vrot.lane.b32.xlu1 %v1799_v41, %s1668_s28 }
  0xec   :  { %331 = vrot.lane.b32.xlu0 %v1779_v30, %s1669_s29 }
  0xef   :  { %329 = vrot.lane.b32.xlu1 %v1785_v32, %s1669_s29 }
  0xf0   :  { %360 = vrot.lane.b32.xlu0 %v1777_v28, %s1670_s30 }
  0xf3   :  { %333 = vrot.lane.b32.xlu1 %v1799_v41, %s1669_s29 }
  0xf4   :  { %364 = vrot.lane.b32.xlu0 %v1779_v30, %s1670_s30 }
  0xf7   :  { %362 = vrot.lane.b32.xlu1 %v1785_v32, %s1670_s30 }
  0xf8   :  { %393 = vrot.lane.b32.xlu0 %v1777_v28, %s1671_s9 }
  0xfb   :  { %366 = vrot.lane.b32.xlu1 %v1799_v41, %s1670_s30 }
  0xfc   :  { %397 = vrot.lane.b32.xlu0 %v1779_v30, %s1671_s9 }
  0xff   :  { %395 = vrot.lane.b32.xlu1 %v1785_v32, %s1671_s9 }
 0x100   :  { %426 = vrot.lane.b32.xlu0 %v1777_v28, %s1672_s10 }
 0x103   :  { %399 = vrot.lane.b32.xlu1 %v1799_v41, %s1671_s9 }
 0x104   :  { %430 = vrot.lane.b32.xlu0 %v1779_v30, %s1672_s10 }
 0x107   :  { %428 = vrot.lane.b32.xlu1 %v1785_v32, %s1672_s10 }
 0x108   :  { %459 = vrot.lane.b32.xlu0 %v1777_v28, %s1673_s11 }
 0x10b   :  { %432 = vrot.lane.b32.xlu1 %v1799_v41, %s1672_s10 }
 0x10c   :  { %463 = vrot.lane.b32.xlu0 %v1779_v30, %s1673_s11 }
 0x10f   :  { %461 = vrot.lane.b32.xlu1 %v1785_v32, %s1673_s11 }
 0x110   :  { %492 = vrot.lane.b32.xlu0 %v1777_v28, %s1674_s12 }
 0x113   :  { %465 = vrot.lane.b32.xlu1 %v1799_v41, %s1673_s11 }
 0x114   :  { %496 = vrot.lane.b32.xlu0 %v1779_v30, %s1674_s12 }
 0x117   :  { %494 = vrot.lane.b32.xlu1 %v1785_v32, %s1674_s12 }
 0x118   :  { %525 = vrot.lane.b32.xlu0 %v1777_v28, %s1675_s13 }
 0x11b   :  { %498 = vrot.lane.b32.xlu1 %v1799_v41, %s1674_s12 }
 0x11c   :  { %529 = vrot.lane.b32.xlu0 %v1779_v30, %s1675_s13 }
 0x11f   :  { %527 = vrot.lane.b32.xlu1 %v1785_v32, %s1675_s13 }
 0x120   :  { %706 = vrot.lane.b32.xlu0 %v1859_v45, %s1668_s28 }
 0x123   :  { %531 = vrot.lane.b32.xlu1 %v1799_v41, %s1675_s13 }
 0x124   :  { %710 = vrot.lane.b32.xlu0 %v1866_v48, %s1668_s28 }
 0x127   :  { %708 = vrot.lane.b32.xlu1 %v1876_v50, %s1668_s28 }
 0x128   :  { %722 = vrot.lane.b32.xlu0 %v1859_v45, %s1669_s29 }
 0x12b   :  { %712 = vrot.lane.b32.xlu1 %v1885_v52, %s1668_s28 }
 0x12c   :  { %726 = vrot.lane.b32.xlu0 %v1866_v48, %s1669_s29 }
 0x12f   :  { %724 = vrot.lane.b32.xlu1 %v1876_v50, %s1669_s29 }
 0x130   :  { %738 = vrot.lane.b32.xlu0 %v1859_v45, %s1670_s30 }
 0x133   :  { %728 = vrot.lane.b32.xlu1 %v1885_v52, %s1669_s29 }
 0x134   :  { %742 = vrot.lane.b32.xlu0 %v1866_v48, %s1670_s30 }
 0x137   :  { %740 = vrot.lane.b32.xlu1 %v1876_v50, %s1670_s30 }
 0x138   :  { %754 = vrot.lane.b32.xlu0 %v1859_v45, %s1671_s9 }
 0x13b   :  { %744 = vrot.lane.b32.xlu1 %v1885_v52, %s1670_s30 }
 0x13c   :  { %758 = vrot.lane.b32.xlu0 %v1866_v48, %s1671_s9 }
 0x13f   :  { %756 = vrot.lane.b32.xlu1 %v1876_v50, %s1671_s9 }
 0x140   :  { %770 = vrot.lane.b32.xlu0 %v1859_v45, %s1672_s10 }
 0x143   :  { %760 = vrot.lane.b32.xlu1 %v1885_v52, %s1671_s9 }
 0x144   :  { %774 = vrot.lane.b32.xlu0 %v1866_v48, %s1672_s10 }
 0x147   :  { %772 = vrot.lane.b32.xlu1 %v1876_v50, %s1672_s10 }
 0x148   :  { %786 = vrot.lane.b32.xlu0 %v1859_v45, %s1673_s11 }
 0x14b   :  { %776 = vrot.lane.b32.xlu1 %v1885_v52, %s1672_s10 }
 0x14c   :  { %790 = vrot.lane.b32.xlu0 %v1866_v48, %s1673_s11 }
 0x14f   :  { %788 = vrot.lane.b32.xlu1 %v1876_v50, %s1673_s11 }
 0x150   :  { %802 = vrot.lane.b32.xlu0 %v1859_v45, %s1674_s12 }
 0x153   :  { %792 = vrot.lane.b32.xlu1 %v1885_v52, %s1673_s11 }
 0x154   :  { %806 = vrot.lane.b32.xlu0 %v1866_v48, %s1674_s12 }
 0x155   :  { %v293_v54 = vpop.permute.xlu1 %292 }
 0x156   :  { %v297_v55 = vpop.permute.xlu0 %296 }
 0x157   :  { %804 = vrot.lane.b32.xlu1 %v1876_v50, %s1674_s12 }
 0x158   :  { %818 = vrot.lane.b32.xlu0 %v1859_v45, %s1675_s13 }
 0x159   :  { %v295_v58 = vpop.permute.xlu1 %294 }
 0x15a   :  { %v328_v59 = vpop.permute.xlu0 %327  ;;  %v305_v7 = vsel %vm302_vm1, %v293_v54, %v295_v58  ;;  %v304_v29 = vsel %vm302_vm1, %v295_v58, %v297_v55 }
 0x15b   :  { %808 = vrot.lane.b32.xlu1 %v1885_v52, %s1674_s12  ;;  %v324_v17 = vmul.f32 %v1965_v5, %v305_v7  ;;  %v325_v49 = vmul.f32 %v2006_v25, %v304_v29 }
 0x15c   :  { %822 = vrot.lane.b32.xlu0 %v1866_v48, %s1675_s13 }
 0x15d   :  { %v299_v63 = vpop.permute.xlu1 %298 }
 0x15e   :  { %v332_v1 = vpop.permute.xlu0 %331  ;;  %v306_v22 = vsel %vm302_vm1, %v299_v63, %v293_v54  ;;  %v303_v26 = vsel %vm302_vm1, %v297_v55, %v299_v63 }
 0x15f   :  { %820 = vrot.lane.b32.xlu1 %v1876_v50, %s1675_s13  ;;  %v323_v34 = vmul.f32 %v1981_v9, %v306_v22  ;;  %v326_v44 = vmul.f32 %v1984_v10, %v303_v26  ;;  %v2042_v22 = vrot.slane %v1962_v4, %v375_v60 }
 0x160   :  { %856 = vperm.xlu0 %1654, %v55_v0   ;;  %v2029_v0 = vrot.slane %v1946_v62, %v375_v60 }
 0x161   :  { %v330_v11 = vpop.permute.xlu1 %329 }
 0x162   :  { %v361_v12 = vpop.permute.xlu0 %360  ;;  %v338_v14 = vsel %vm335_vm2, %v328_v59, %v330_v11  ;;  %v337_v23 = vsel %vm335_vm2, %v330_v11, %v332_v1  ;;  %v2038_v11 = vrot.slane %v1957_v2, %v375_v60 }
 0x163   :  { %v357_v24 = vmul.f32 %v1971_v6, %v338_v14  ;;  %824 = vrot.lane.b32.xlu1 %v1885_v52, %s1675_s13  ;;  %v358_v35 = vmul.f32 %v1987_v13, %v337_v23 }
 0x165   :  { %v334_v31 = vpop.permute.xlu1 %333  ;;  %v559_v33 = vpack.c.bf16 %v357_v24, %v324_v17  ;;  %v560_v55 = vpack.c.bf16 %v358_v35, %v325_v49  ;;  %v441_v17 = vsub.s32 4, %v1933_v56  ;;  %v2060_v35 = vrot.slane %v1978_v8, %v375_v60 }
 0x166   :  { %v365_v36 = vpop.permute.xlu0 %364  ;;  %v336_v42 = vsel %vm335_vm2, %v332_v1, %v334_v31  ;;  %v339_v43 = vsel %vm335_vm2, %v334_v31, %v328_v59  ;;  %v408_v59 = vsub.s32 3, %v1933_v56 }
 0x167   :  { %v356_v46 = vmul.f32 %v1992_v15, %v339_v43  ;;  %v359_v47 = vmul.f32 %v1995_v16, %v336_v42  ;;  %610 = vmatprep.subr.bf16.mxu0 %v559_v33  ;;  %861 = vperm.xlu1 %1655, %v56_v27   ;;  %v2070_v49 = vrot.slane %v1957_v2, %v441_v17 }
 0x168   :  { %v2033_v1 = vrot.slane %v1946_v62, %v408_v59  ;;  %v2045_v24 = vrot.slane %v1978_v8, %v408_v59  ;;  %v2050_v27 = vrot.slane %v1957_v2, %v408_v59 }
 0x169   :  { %v558_v51 = vpack.c.bf16 %v356_v46, %v323_v34  ;;  %v363_v53 = vpop.permute.xlu1 %362  ;;  %v561_v54 = vpack.c.bf16 %v359_v47, %v326_v44  ;;  %v2057_v34 = vrot.slane %v1962_v4, %v408_v59 }
 0x16a   :  { %v394_v58 = vpop.permute.xlu0 %393  ;;  %v371_v7 = vsel %vm368_vm3, %v361_v12, %v363_v53  ;;  %v370_v44 = vsel %vm368_vm3, %v363_v53, %v365_v36 }
 0x16b   :  { %611 = vmatpush1.bf16.msra.mxu0 %v558_v51  ;;  %653 = vmatprep.subr.bf16.mxu1 %v561_v54  ;;  %v390_v29 = vmul.f32 %v2029_v0, %v371_v7  ;;  %v391_v7 = vmul.f32 %v2060_v35, %v370_v44  ;;  %v2095_v44 = vrot.slane %v1962_v4, %v441_v17 }
 0x16c   :  { %654 = vmatpush1.bf16.msra.mxu1 %v560_v55 }
 0x16d   :  { %v367_v61 = vpop.permute.xlu1 %366 }
 0x16e   :  { %v398_v63 = vpop.permute.xlu0 %397  ;;  %v369_v42 = vsel %vm368_vm3, %v365_v36, %v367_v61  ;;  %v372_v43 = vsel %vm368_vm3, %v367_v61, %v361_v12  ;;  %v2078_v12 = vrot.slane %v1946_v62, %v441_v17 }
 0x16f   :  { %v389_v36 = vmul.f32 %v2038_v11, %v372_v43  ;;  %v392_v53 = vmul.f32 %v2042_v22, %v369_v42  ;;  %v2090_v42 = vrot.slane %v1978_v8, %v441_v17 }
 0x171   :  { %v396_v14 = vpop.permute.xlu1 %395 }
 0x172   :  { %v427_v23 = vpop.permute.xlu0 %426  ;;  %v404_v26 = vsel %vm401_vm4, %v394_v58, %v396_v14  ;;  %v403_v31 = vsel %vm401_vm4, %v396_v14, %v398_v63 }
 0x173   :  { %v423_v33 = vmul.f32 %v2033_v1, %v404_v26  ;;  %v424_v51 = vmul.f32 %v2045_v24, %v403_v31 }
 0x175   :  { %v400_v46 = vpop.permute.xlu1 %399  ;;  %v563_v47 = vpack.c.bf16 %v423_v33, %v390_v29  ;;  %v564_v29 = vpack.c.bf16 %v424_v51, %v391_v7 }
 0x176   :  { %v431_v54 = vpop.permute.xlu0 %430  ;;  %v402_v55 = vsel %vm401_vm4, %v398_v63, %v400_v46  ;;  %v405_v60 = vsel %vm401_vm4, %v400_v46, %v394_v58 }
 0x177   :  { %v422_v59 = vmul.f32 %v2050_v27, %v405_v60  ;;  %v425_v61 = vmul.f32 %v2057_v34, %v402_v55  ;;  %612 = vmatprep.subr.bf16.mxu0 %v563_v47 }
 0x179   :  { %v562_v14 = vpack.c.bf16 %v422_v59, %v389_v36  ;;  %v429_v26 = vpop.permute.xlu1 %428  ;;  %v565_v63 = vpack.c.bf16 %v425_v61, %v392_v53 }
 0x17a   :  { %v460_v31 = vpop.permute.xlu0 %459  ;;  %v436_v58 = vsel %vm434_vm5, %v429_v26, %v431_v54  ;;  %v437_v33 = vsel %vm434_vm5, %v427_v23, %v429_v26 }
 0x17b   :  { %v455_v43 = vmul.f32 %v2070_v49, %v437_v33  ;;  %v456_v46 = vmul.f32 %v2078_v12, %v436_v58  ;;  %613 = vmatpush1.bf16.msra.mxu0 %v562_v14  ;;  %655 = vmatprep.subr.bf16.mxu1 %v565_v63 }
 0x17c   :  { %656 = vmatpush1.bf16.msra.mxu1 %v564_v29 }
 0x17d   :  { %v566_v47 = vpack.c.bf16 %v455_v43, %v1777_v28  ;;  %v433_v51 = vpop.permute.xlu1 %432  ;;  %v567_v55 = vpack.c.bf16 %v456_v46, %v1785_v32  ;;  %v474_v32 = vsub.s32 5, %v1933_v56 }
 0x17e   :  { %v464_v60 = vpop.permute.xlu0 %463  ;;  %v435_v36 = vsel %vm434_vm5, %v431_v54, %v433_v51  ;;  %v438_v53 = vsel %vm434_vm5, %v433_v51, %v427_v23  ;;  %v507_v54 = vsub.s32 6, %v1933_v56 }
 0x17f   :  { %v457_v59 = vmul.f32 %v2090_v42, %v435_v36  ;;  %v458_v61 = vmul.f32 %v2095_v44, %v438_v53  ;;  %614 = vmatprep.subr.bf16.mxu0 %v567_v55  ;;  %v2111_v26 = vrot.slane %v1957_v2, %v474_v32  ;;  %v2114_v29 = vrot.slane %v1946_v62, %v474_v32 }
 0x180   :  { %615 = vmatpush1.bf16.msra.mxu0 %v566_v47  ;;  %v2128_v43 = vrot.slane %v1978_v8, %v474_v32  ;;  %v2131_v46 = vrot.slane %v1962_v4, %v474_v32  ;;  %v2134_v51 = vrot.slane %v1978_v8, %v507_v54 }
 0x181   :  { %v568_v17 = vpack.c.bf16 %v457_v59, %v1779_v30  ;;  %v462_v7 = vpop.permute.xlu1 %461  ;;  %v569_v28 = vpack.c.bf16 %v458_v61, %v1799_v41  ;;  %3027 = vst [vmem:[#allocation10_spill] sm:$0xff] %v2111_v26  ;;  %3028 = vst [vmem:[#allocation11_spill] sm:$0xff] %v2114_v29  ;;  %v2118_v30 = vrot.slane %v1957_v2, %v507_v54  ;;  %v540_v61 = vsub.s32 7, %v1933_v56 }
 0x182   :  { %v493_v14 = vpop.permute.xlu0 %492  ;;  %v2121_v41 = vrot.slane %v1946_v62, %v507_v54  ;;  %v469_v58 = vsel %vm467_vm6, %v462_v7, %v464_v60  ;;  %v470_v33 = vsel %vm467_vm6, %v460_v31, %v462_v7  ;;  %3031 = vst [vmem:[#allocation14_spill] sm:$0xff] %v2128_v43  ;;  %3032 = vst [vmem:[#allocation15_spill] sm:$0xff] %v2131_v46 }
 0x183   :  { %657 = vmatprep.subr.bf16.mxu1 %v569_v28  ;;  %3029 = vst [vmem:[#allocation12_spill] sm:$0xff] %v2118_v30  ;;  %3033 = vst [vmem:[#allocation16_spill] sm:$0xff] %v2134_v51  ;;  %v2141_v59 = vrot.slane %v1962_v4, %v507_v54  ;;  %v489_v7 = vmul.f32 %v2114_v29, %v469_v58 }
 0x184   :  { %658 = vmatpush1.bf16.msra.mxu1 %v568_v17  ;;  %3030 = vst [vmem:[#allocation13_spill] sm:$0xff] %v2121_v41  ;;  %v488_v17 = vmul.f32 %v2111_v26, %v470_v33 }
 0x185   :  { %v466_v23 = vpop.permute.xlu1 %465  ;;  %3034 = vst [vmem:[#allocation17_spill] sm:$0xff] %v2141_v59 }
 0x186   :  { %v497_v63 = vpop.permute.xlu0 %496  ;;  %v468_v3 = vsel %vm467_vm6, %v464_v60, %v466_v23  ;;  %v471_v40 = vsel %vm467_vm6, %v466_v23, %v460_v31  ;;  %v2161_v60 = vrot.slane %v1946_v62, %v540_v61 }
 0x187   :  { %v490_v31 = vmul.f32 %v2128_v43, %v468_v3  ;;  %v491_v23 = vmul.f32 %v2131_v46, %v471_v40 }
 0x188   :  { %3036 = vst [vmem:[#allocation19_spill] sm:$0xff] %v2161_v60 }
 0x189   :  { %v495_v47 = vpop.permute.xlu1 %494 }
 0x18a   :  { %v526_v55 = vpop.permute.xlu0 %525  ;;  %v502_v36 = vsel %vm500_vm7, %v495_v47, %v497_v63  ;;  %v503_v53 = vsel %vm500_vm7, %v493_v14, %v495_v47 }
 0x18b   :  { %v521_v28 = vmul.f32 %v2118_v30, %v503_v53  ;;  %v522_v32 = vmul.f32 %v2121_v41, %v502_v36  ;;  %v2158_v36 = vrot.slane %v1957_v2, %v540_v61 }
 0x18d   :  { %v570_v47 = vpack.c.bf16 %v521_v28, %v488_v17  ;;  %v499_v39 = vpop.permute.xlu1 %498  ;;  %v571_v54 = vpack.c.bf16 %v522_v32, %v489_v7  ;;  %3035 = vst [vmem:[#allocation18_spill] sm:$0xff] %v2158_v36  ;;  %v2177_v32 = vrot.slane %v1962_v4, %v540_v61 }
 0x18e   :  { %v530_v56 = vpop.permute.xlu0 %529  ;;  %v501_v33 = vsel %vm500_vm7, %v497_v63, %v499_v39  ;;  %v504_v58 = vsel %vm500_vm7, %v499_v39, %v493_v14  ;;  %v2174_v14 = vrot.slane %v1978_v8, %v540_v61  ;;  %v1660_v61 = vld [vmem:[%s2975_s4] sm:$0xff]  }
 0x18f   :  { %v523_v53 = vmul.f32 %v2134_v51, %v501_v33  ;;  %v524_v17 = vmul.f32 %v2141_v59, %v504_v58  ;;  %616 = vmatprep.subr.bf16.mxu0 %v571_v54  ;;  %3038 = vst [vmem:[#allocation21_spill] sm:$0xff] %v2177_v32 }
 0x190   :  { %617 = vmatpush1.bf16.msra.mxu0 %v570_v47  ;;  %3037 = vst [vmem:[#allocation20_spill] sm:$0xff] %v2174_v14 }
 0x191   :  { %v572_v63 = vpack.c.bf16 %v523_v53, %v490_v31  ;;  %v528_v7 = vpop.permute.xlu1 %527  ;;  %v573_v28 = vpack.c.bf16 %v524_v17, %v491_v23 }
 0x192   :  { %v707_v39 = vpop.permute.xlu0 %706  ;;  %v535_v2 = vsel %vm533_vm8, %v528_v7, %v530_v56  ;;  %v536_v62 = vsel %vm533_vm8, %v526_v55, %v528_v7 }
 0x193   :  { %v554_v3 = vmul.f32 %v2158_v36, %v536_v62  ;;  %v555_v40 = vmul.f32 %v2161_v60, %v535_v2  ;;  %659 = vmatprep.subr.bf16.mxu1 %v573_v28  ;;  %v3039_v28 = vmov 0  }
 0x194   :  { %660 = vmatpush1.bf16.msra.mxu1 %v572_v63 }
 0x195   :  { %v574_v47 = vpack.c.bf16 %v554_v3, %v554_v3  ;;  %v575_v54 = vpack.c.bf16 %v555_v40, %v555_v40  ;;  %v532_v33 = vpop.permute.xlu1 %531 }
 0x196   :  { %v711_v58 = vpop.permute.xlu0 %710  ;;  %v534_v31 = vsel %vm533_vm8, %v530_v56, %v532_v33  ;;  %v537_v23 = vsel %vm533_vm8, %v532_v33, %v526_v55 }
 0x197   :  { %v556_v53 = vmul.f32 %v2174_v14, %v534_v31  ;;  %v557_v8 = vmul.f32 %v2177_v32, %v537_v23  ;;  %1624 = vmatprep.subr.msk.bf16.mxu0 %vm597_vm9, %v575_v54  ;;  %v599_v4 = vsel %vm597_vm9, %v574_v47, 0 }
 0x198   :  { %619 = vmatpush1.bf16.msra.mxu0 %v599_v4 }
 0x199   :  { %v576_v17 = vpack.c.bf16 %v556_v53, %v556_v53  ;;  %v577_v63 = vpack.c.bf16 %v557_v8, %v557_v8  ;;  %v709_v56 = vpop.permute.xlu1 %708 }
 0x19a   :  { %v723_v7 = vpop.permute.xlu0 %722  ;;  %v716_v3 = vsel %vm302_vm1, %v707_v39, %v709_v56  ;;  %v715_v4 = vsel %vm302_vm1, %v709_v56, %v711_v58 }
 0x19b   :  { %1626 = vmatprep.subr.msk.bf16.mxu1 %vm597_vm9, %v577_v63  ;;  %v605_v55 = vsel %vm597_vm9, %v576_v17, 0  ;;  %1625 = vmatmul.mubr.msk.bf16.vlgmr.msra.gmra.mrb[16].mxu0 %vm593_vm10, %v1660_v61  ;;  %v719_v33 = vmul.f32 %v716_v3, %v1965_v5 }
 0x19c   :  { %662 = vmatpush1.bf16.msra.mxu1 %v605_v55  ;;  %916 = vmatprep.mubr.bf16.mxu0 %v3039_v28 }
 0x19d   :  { %v713_v2 = vpop.permute.xlu1 %712 }
 0x19e   :  { %v727_v62 = vpop.permute.xlu0 %726  ;;  %v714_v53 = vsel %vm302_vm1, %v711_v58, %v713_v2  ;;  %v717_v8 = vsel %vm302_vm1, %v713_v2, %v707_v39  ;;  %v720_v58 = vmul.f32 %v715_v4, %v2006_v25 }
 0x19f   :  { %1627 = vmatmul.mubr.msk.bf16.vlgmr.msra.gmra.mrb[16].mxu1 %vm593_vm10, %v1660_v61  ;;  %v721_v38 = vmul.f32 %v714_v53, %v1984_v10 }
 0x1a0   :  { %959 = vmatprep.mubr.bf16.mxu1 %v3039_v28 }
 0x1a1   :  { %v725_v40 = vpop.permute.xlu1 %724 }
 0x1a2   :  { %v739_v47 = vpop.permute.xlu0 %738  ;;  %v732_v54 = vsel %vm335_vm2, %v723_v7, %v725_v40  ;;  %v731_v31 = vsel %vm335_vm2, %v725_v40, %v727_v62 }
 0x1a3   :  { %v735_v23 = vmul.f32 %v732_v54, %v1971_v6  ;;  %v736_v63 = vmul.f32 %v731_v31, %v1987_v13  ;;  %v718_v54 = vmul.f32 %v717_v8, %v1981_v9 }
 0x1a5   :  { %v729_v61 = vpop.permute.xlu1 %728  ;;  %v835_v17 = vpack.c.bf16 %v735_v23, %v719_v33  ;;  %v836_v23 = vpack.c.bf16 %v736_v63, %v720_v58 }
 0x1a6   :  { %v743_v55 = vpop.permute.xlu0 %742  ;;  %v730_v3 = vsel %vm335_vm2, %v727_v62, %v729_v61  ;;  %v733_v40 = vsel %vm335_vm2, %v729_v61, %v723_v7 }
 0x1a7   :  { %v734_v39 = vmul.f32 %v733_v40, %v1992_v15  ;;  %v737_v2 = vmul.f32 %v730_v3, %v1995_v16  ;;  %884 = vmatprep.subr.bf16.mxu0 %v835_v17 }
 0x1a9   :  { %v834_v56 = vpack.c.bf16 %v734_v39, %v718_v54  ;;  %v741_v33 = vpop.permute.xlu1 %740  ;;  %v837_v31 = vpack.c.bf16 %v737_v2, %v721_v38 }
 0x1aa   :  { %v755_v37 = vpop.permute.xlu0 %754  ;;  %v748_v53 = vsel %vm368_vm3, %v739_v47, %v741_v33  ;;  %v747_v54 = vsel %vm368_vm3, %v741_v33, %v743_v55 }
 0x1ab   :  { %885 = vmatpush1.bf16.msra.mxu0 %v834_v56  ;;  %927 = vmatprep.subr.bf16.mxu1 %v837_v31  ;;  %v751_v4 = vmul.f32 %v748_v53, %v2029_v0 }
 0x1ac   :  { %928 = vmatpush1.bf16.msra.mxu1 %v836_v23 }
 0x1ad   :  { %v745_v7 = vpop.permute.xlu1 %744 }
 0x1ae   :  { %v759_v62 = vpop.permute.xlu0 %758  ;;  %v746_v3 = vsel %vm368_vm3, %v743_v55, %v745_v7  ;;  %v749_v40 = vsel %vm368_vm3, %v745_v7, %v739_v47  ;;  %v752_v55 = vmul.f32 %v747_v54, %v2060_v35 }
 0x1af   :  { %v750_v53 = vmul.f32 %v749_v40, %v2038_v11 }
 0x1b1   :  { %v757_v8 = vpop.permute.xlu1 %756 }
 0x1b2   :  { %v771_v61 = vpop.permute.xlu0 %770  ;;  %v764_v17 = vsel %vm401_vm4, %v755_v37, %v757_v8  ;;  %v763_v38 = vsel %vm401_vm4, %v757_v8, %v759_v62  ;;  %v753_v8 = vmul.f32 %v746_v3, %v2042_v22 }
 0x1b3   :  { %v767_v63 = vmul.f32 %v764_v17, %v2033_v1  ;;  %v768_v58 = vmul.f32 %v763_v38, %v2045_v24 }
 0x1b5   :  { %v761_v39 = vpop.permute.xlu1 %760  ;;  %v839_v2 = vpack.c.bf16 %v767_v63, %v751_v4  ;;  %v840_v38 = vpack.c.bf16 %v768_v58, %v752_v55 }
 0x1b6   :  { %v775_v56 = vpop.permute.xlu0 %774  ;;  %v762_v31 = vsel %vm401_vm4, %v759_v62, %v761_v39  ;;  %v765_v23 = vsel %vm401_vm4, %v761_v39, %v755_v37 }
 0x1b7   :  { %v766_v47 = vmul.f32 %v765_v23, %v2050_v27  ;;  %v769_v7 = vmul.f32 %v762_v31, %v2057_v34  ;;  %886 = vmatprep.subr.bf16.mxu0 %v839_v2 }
 0x1b9   :  { %v838_v33 = vpack.c.bf16 %v766_v47, %v750_v53  ;;  %v773_v17 = vpop.permute.xlu1 %772  ;;  %v841_v4 = vpack.c.bf16 %v769_v7, %v753_v8 }
 0x1ba   :  { %v787_v63 = vpop.permute.xlu0 %786  ;;  %v779_v62 = vsel %vm434_vm5, %v773_v17, %v775_v56  ;;  %v780_v37 = vsel %vm434_vm5, %v771_v61, %v773_v17 }
 0x1bb   :  { %v782_v3 = vmul.f32 %v780_v37, %v2070_v49  ;;  %v783_v40 = vmul.f32 %v779_v62, %v2078_v12  ;;  %887 = vmatpush1.bf16.msra.mxu0 %v838_v33  ;;  %929 = vmatprep.subr.bf16.mxu1 %v841_v4 }
 0x1bc   :  { %930 = vmatpush1.bf16.msra.mxu1 %v840_v38 }
 0x1bd   :  { %v842_v54 = vpack.c.bf16 %v782_v3, %v1859_v45  ;;  %v777_v39 = vpop.permute.xlu1 %776  ;;  %v843_v2 = vpack.c.bf16 %v783_v40, %v1876_v50 }
 0x1be   :  { %v791_v58 = vpop.permute.xlu0 %790  ;;  %v778_v31 = vsel %vm434_vm5, %v775_v56, %v777_v39  ;;  %v781_v23 = vsel %vm434_vm5, %v777_v39, %v771_v61 }
 0x1bf   :  { %v784_v53 = vmul.f32 %v778_v31, %v2090_v42  ;;  %v785_v8 = vmul.f32 %v781_v23, %v2095_v44  ;;  %888 = vmatprep.subr.bf16.mxu0 %v843_v2 }
 0x1c0   :  { %889 = vmatpush1.bf16.msra.mxu0 %v842_v54 }
 0x1c1   :  { %v844_v47 = vpack.c.bf16 %v784_v53, %v1866_v48  ;;  %v789_v7 = vpop.permute.xlu1 %788  ;;  %v845_v45 = vpack.c.bf16 %v785_v8, %v1885_v52 }
 0x1c2   :  { %v803_v55 = vpop.permute.xlu0 %802  ;;  %v795_v56 = vsel %vm467_vm6, %v789_v7, %v791_v58  ;;  %v796_v61 = vsel %vm467_vm6, %v787_v63, %v789_v7 }
 0x1c3   :  { %931 = vmatprep.subr.bf16.mxu1 %v845_v45  ;;  %v798_v52 = vmul.f32 %v796_v61, %v2111_v26  ;;  %v799_v38 = vmul.f32 %v795_v56, %v2114_v29 }
 0x1c4   :  { %932 = vmatpush1.bf16.msra.mxu1 %v844_v47 }
 0x1c5   :  { %v793_v50 = vpop.permute.xlu1 %792 }
 0x1c6   :  { %v807_v33 = vpop.permute.xlu0 %806  ;;  %v794_v40 = vsel %vm467_vm6, %v791_v58, %v793_v50  ;;  %v797_v54 = vsel %vm467_vm6, %v793_v50, %v787_v63 }
 0x1c7   :  { %v800_v8 = vmul.f32 %v794_v40, %v2128_v43  ;;  %v801_v47 = vmul.f32 %v797_v54, %v2131_v46 }
 0x1c9   :  { %v805_v17 = vpop.permute.xlu1 %804 }
 0x1ca   :  { %v811_v4 = vsel %vm500_vm7, %v805_v17, %v807_v33  ;;  %v812_v48 = vsel %vm500_vm7, %v803_v55, %v805_v17  ;;  %v819_v62 = vpop.permute.xlu0 %818 }
 0x1cb   :  { %v814_v37 = vmul.f32 %v812_v48, %v2118_v30  ;;  %v815_v3 = vmul.f32 %v811_v4, %v2121_v41 }
 0x1cd   :  { %v846_v39 = vpack.c.bf16 %v814_v37, %v798_v52  ;;  %v809_v2 = vpop.permute.xlu1 %808  ;;  %v847_v31 = vpack.c.bf16 %v815_v3, %v799_v38 }
 0x1ce   :  { %v810_v23 = vsel %vm500_vm7, %v807_v33, %v809_v2  ;;  %v813_v53 = vsel %vm500_vm7, %v809_v2, %v803_v55  ;;  %v823_v63 = vpop.permute.xlu0 %822 }
 0x1cf   :  { %v816_v7 = vmul.f32 %v810_v23, %v2134_v51  ;;  %v817_v58 = vmul.f32 %v813_v53, %v2141_v59  ;;  %890 = vmatprep.subr.bf16.mxu0 %v847_v31  ;;  %v2305_v23 = vpop.f32.mrb[8].mxu0 }
 0x1d0   :  { %891 = vmatpush1.bf16.msra.mxu0 %v846_v39  ;;  %v1661_v39 = vld [vmem:[%s2977_s5] sm:$0xff]   ;;  %3040 = vst [vmem:[#allocation22_spill] sm:$0xff] %v2305_v23  ;;  %v2307_v53 = vpop.f32.mrb[9].mxu0 }
 0x1d1   :  { %v848_v45 = vpack.c.bf16 %v816_v7, %v800_v8  ;;  %v821_v50 = vpop.permute.xlu1 %820  ;;  %v849_v56 = vpack.c.bf16 %v817_v58, %v801_v47  ;;  %3041 = vst [vmem:[#allocation23_spill] sm:$0xff] %v2307_v53  ;;  %v2309_v8 = vpop.f32.mrb[8].mxu1 }
 0x1d2   :  { %v827_v33 = vsel %vm533_vm8, %v821_v50, %v823_v63  ;;  %v828_v55 = vsel %vm533_vm8, %v819_v62, %v821_v50  ;;  %3042 = vst [vmem:[#allocation24_spill] sm:$0xff] %v2309_v8  ;;  %v2311_v47 = vpop.f32.mrb[10].mxu0  ;;  %v2313_v7 = vpop.f32.mrb[9].mxu1 }
 0x1d3   :  { %v830_v61 = vmul.f32 %v828_v55, %v2158_v36  ;;  %v831_v17 = vmul.f32 %v827_v33, %v2161_v60  ;;  %933 = vmatprep.subr.bf16.mxu1 %v849_v56  ;;  %3043 = vst [vmem:[#allocation25_spill] sm:$0xff] %v2311_v47  ;;  %3044 = vst [vmem:[#allocation26_spill] sm:$0xff] %v2313_v7  ;;  %v2315_v58 = vpop.f32.mrb[11].mxu0 }
 0x1d4   :  { %934 = vmatpush1.bf16.msra.mxu1 %v848_v45  ;;  %3045 = vst [vmem:[#allocation27_spill] sm:$0xff] %v2315_v58  ;;  %v2321_v50 = vpop.f32.mrb[12].mxu0 }
 0x1d5   :  { %v850_v4 = vpack.c.bf16 %v830_v61, %v830_v61  ;;  %v851_v48 = vpack.c.bf16 %v831_v17, %v831_v17  ;;  %v825_v52 = vpop.permute.xlu1 %824  ;;  %3048 = vst [vmem:[#allocation30_spill] sm:$0xff] %v2321_v50  ;;  %v2323_v56 = vpop.f32.mrb[13].mxu0 }
 0x1d6   :  { %v826_v38 = vsel %vm533_vm8, %v823_v63, %v825_v52  ;;  %v829_v37 = vsel %vm533_vm8, %v825_v52, %v819_v62  ;;  %v2317_v63 = vpop.f32.mrb[10].mxu1  ;;  %3049 = vst [vmem:[#allocation31_spill] sm:$0xff] %v2323_v56  ;;  %v204_v55 = vpop.f32.mrb[14].mxu0 }
 0x1d7   :  { %v832_v3 = vmul.f32 %v826_v38, %v2174_v14  ;;  %v833_v40 = vmul.f32 %v829_v37, %v2177_v32  ;;  %1629 = vmatprep.subr.msk.bf16.mxu0 %vm597_vm9, %v851_v48  ;;  %v873_v54 = vsel %vm597_vm9, %v850_v4, 0  ;;  %3046 = vst [vmem:[#allocation28_spill] sm:$0xff] %v2317_v63  ;;  %v2319_v45 = vpop.f32.mrb[11].mxu1  ;;  %v205_v17 = vpop.f32.mrb[15].mxu0 }
 0x1d8   :  { %893 = vmatpush1.bf16.msra.mxu0 %v873_v54  ;;  %3047 = vst [vmem:[#allocation29_spill] sm:$0xff] %v2319_v45  ;;  %v2325_v33 = vpop.f32.mrb[12].mxu1 }
 0x1d9   :  { %v852_v2 = vpack.c.bf16 %v832_v3, %v832_v3  ;;  %v853_v31 = vpack.c.bf16 %v833_v40, %v833_v40  ;;  %3050 = vst [vmem:[#allocation32_spill] sm:$0xff] %v2325_v33  ;;  %v2327_v61 = vpop.f32.mrb[13].mxu1 }
 0x1da   :  { %3051 = vst [vmem:[#allocation33_spill] sm:$0xff] %v2327_v61  ;;  %v275_v4 = vpop.f32.mrb[14].mxu1 }
 0x1db   :  { %1630 = vmatmul.mubr.msk.bf16.vlgmr.msra.gmra.mrb[20].mxu0 %vm593_vm10, %v1661_v39  ;;  %1631 = vmatprep.subr.msk.bf16.mxu1 %vm597_vm9, %v853_v31  ;;  %v879_v62 = vsel %vm597_vm9, %v852_v2, 0  ;;  %v276_v48 = vpop.f32.mrb[15].mxu1 }
 0x1dc   :  { %936 = vmatpush1.bf16.msra.mxu1 %v879_v62 }
 0x1df   :  { %1632 = vmatmul.mubr.msk.bf16.vlgmr.msra.gmra.mrb[20].mxu1 %vm593_vm10, %v1661_v39  ;;  %v857_v31 = vpop.permute.xlu0 %856 }
 0x1e6   :  { %v862_v55 = vpop.permute.xlu1 %861 }
 0x26e   :  { %v2329_v52 = vpop.f32.mrb[16].mxu0 }
 0x26f   :  { %3052 = vst [vmem:[#allocation34_spill] sm:$0xff] %v2329_v52  ;;  %v2331_v38 = vpop.f32.mrb[17].mxu0  ;;  %v51_v52 = vld [vmem:[%s2974_s3 + $0x28] sm:$0xff] }
 0x270   :  { %3053 = vst [vmem:[#allocation35_spill] sm:$0xff] %v2331_v38  ;;  %v2333_v37 = vpop.f32.mrb[18].mxu0 }
 0x271   :  { %3054 = vst [vmem:[#allocation36_spill] sm:$0xff] %v2333_v37  ;;  %v2335_v3 = vpop.f32.mrb[19].mxu0 }
 0x272   :  { %3055 = vst [vmem:[#allocation37_spill] sm:$0xff] %v2335_v3  ;;  %v2337_v40 = vpop.f32.mrb[16].mxu1  ;;  %v57_v3 = vld [vmem:[%s2974_s3 + $0x58] sm:$0xff] }
 0x273   :  { %3056 = vst [vmem:[#allocation38_spill] sm:$0xff] %v2337_v40  ;;  %v2339_v54 = vpop.f32.mrb[17].mxu1  ;;  %v49_v40 = vld [vmem:[%s2974_s3 + $0x18] sm:$0xff] }
 0x274   :  { %3057 = vst [vmem:[#allocation39_spill] sm:$0xff] %v2339_v54  ;;  %v2341_v39 = vpop.f32.mrb[18].mxu1 }
 0x275   :  { %3058 = vst [vmem:[#allocation40_spill] sm:$0xff] %v2341_v39  ;;  %v2343_v2 = vpop.f32.mrb[19].mxu1 }
 0x276   :  { %3059 = vst [vmem:[#allocation41_spill] sm:$0xff] %v2343_v2  ;;  %v54_v2 = vld [vmem:[%s2974_s3 + $0x40] sm:$0xff] }
 0x2ae   :  { %v918_v62 = vpop.f32.mrb[20].mxu0 }
 0x2af   :  { %v919_v17 = vadd.f32 %v918_v62, %v857_v31  ;;  %v920_v4 = vpop.f32.mrb[21].mxu0  ;;  %v53_v62 = vld [vmem:[%s2974_s3 + $0x38] sm:$0xff] }
 0x2b0   :  { %v922_v48 = vpop.f32.mrb[22].mxu0 }
 0x2b1   :  { %v2345_v61 = vmax.f32 %v919_v17, 0.0  ;;  %v923_v33 = vadd.f32 %v922_v48, %v862_v55  ;;  %v924_v45 = vpop.f32.mrb[23].mxu0 }
 0x2b2   :  { %v961_v63 = vpop.f32.mrb[20].mxu1 }
 0x2b3   :  { %v2347_v56 = vmax.f32 %v923_v33, 0.0  ;;  %v962_v50 = vadd.f32 %v961_v63, %v857_v31  ;;  %980 = vrot.lane.b32.xlu0 %v2345_v61, %s1668_s28  ;;  %v963_v58 = vpop.f32.mrb[21].mxu1 }
 0x2b4   :  { %v965_v47 = vpop.f32.mrb[22].mxu1  ;;  %v964_v33 = vadd.f32 %v963_v58, %v857_v31 }
 0x2b5   :  { %v2351_v7 = vmax.f32 %v962_v50, 0.0  ;;  %v966_v8 = vadd.f32 %v965_v47, %v862_v55  ;;  %v967_v53 = vpop.f32.mrb[23].mxu1  ;;  %982 = vrot.lane.b32.xlu1 %v2347_v56, %s1668_s28  ;;  %v925_v47 = vadd.f32 %v924_v45, %v862_v55 }
 0x2b6   :  { %v968_v63 = vadd.f32 %v967_v53, %v862_v55 }
 0x2b7   :  { %3060 = vst [vmem:[#allocation42_spill] sm:$0xff] %v2351_v7  ;;  %v2357_v17 = vmax.f32 %v966_v8, 0.0  ;;  %988 = vrot.lane.b32.xlu0 %v2351_v7, %s1668_s28  ;;  %v921_v8 = vadd.f32 %v920_v4, %v857_v31  ;;  %v2423_v48 = vmax.f32 %v925_v47, 0.0  ;;  %v2427_v4 = vmax.f32 %v964_v33, 0.0  ;;  %v1662_v31 = vld [vmem:[%s2978_s6 + $0x4] ss:$8 sps:$4 sm:$0xff]  }
 0x2b8   :  { %v2431_v45 = vmax.f32 %v968_v63, 0.0  ;;  %1635 = vmatprep.mubr.msk.bf16.mxu0 %vm123_vm0, %v1662_v31  ;;  %1636 = vmatprep.mubr.msk.bf16.mxu1 %vm123_vm0, %v1662_v31  ;;  %v46_v33 = vld [vmem:[%s2974_s3] sm:$0xff] }
 0x2b9   :  { %990 = vrot.lane.b32.xlu1 %v2357_v17, %s1668_s28  ;;  %v2419_v50 = vmax.f32 %v921_v8, 0.0 }
 0x2bb   :  { %1012 = vrot.lane.b32.xlu0 %v2345_v61, %s1669_s29 }
 0x2bd   :  { %1014 = vrot.lane.b32.xlu1 %v2347_v56, %s1669_s29 }
 0x2bf   :  { %1020 = vrot.lane.b32.xlu0 %v2351_v7, %s1669_s29 }
 0x2c1   :  { %1022 = vrot.lane.b32.xlu1 %v2357_v17, %s1669_s29 }
 0x2c3   :  { %1044 = vrot.lane.b32.xlu0 %v2345_v61, %s1670_s30 }
 0x2c5   :  { %1046 = vrot.lane.b32.xlu1 %v2347_v56, %s1670_s30 }
 0x2c7   :  { %1052 = vrot.lane.b32.xlu0 %v2351_v7, %s1670_s30 }
 0x2c9   :  { %1054 = vrot.lane.b32.xlu1 %v2357_v17, %s1670_s30 }
 0x2cb   :  { %1076 = vrot.lane.b32.xlu0 %v2345_v61, %s1671_s9 }
 0x2cd   :  { %1078 = vrot.lane.b32.xlu1 %v2347_v56, %s1671_s9 }
 0x2cf   :  { %1084 = vrot.lane.b32.xlu0 %v2351_v7, %s1671_s9 }
 0x2d1   :  { %1086 = vrot.lane.b32.xlu1 %v2357_v17, %s1671_s9 }
 0x2d3   :  { %1108 = vrot.lane.b32.xlu0 %v2345_v61, %s1672_s10 }
 0x2d5   :  { %1110 = vrot.lane.b32.xlu1 %v2347_v56, %s1672_s10 }
 0x2d7   :  { %1116 = vrot.lane.b32.xlu0 %v2351_v7, %s1672_s10 }
 0x2d9   :  { %1118 = vrot.lane.b32.xlu1 %v2357_v17, %s1672_s10 }
 0x2db   :  { %1140 = vrot.lane.b32.xlu0 %v2345_v61, %s1673_s11 }
 0x2dd   :  { %1142 = vrot.lane.b32.xlu1 %v2347_v56, %s1673_s11 }
 0x2df   :  { %1148 = vrot.lane.b32.xlu0 %v2351_v7, %s1673_s11 }
 0x2e1   :  { %1150 = vrot.lane.b32.xlu1 %v2357_v17, %s1673_s11 }
 0x2e3   :  { %1172 = vrot.lane.b32.xlu0 %v2345_v61, %s1674_s12 }
 0x2e5   :  { %1174 = vrot.lane.b32.xlu1 %v2347_v56, %s1674_s12 }
 0x2e7   :  { %1180 = vrot.lane.b32.xlu0 %v2351_v7, %s1674_s12 }
 0x2e9   :  { %1182 = vrot.lane.b32.xlu1 %v2357_v17, %s1674_s12 }
 0x2eb   :  { %1204 = vrot.lane.b32.xlu0 %v2345_v61, %s1675_s13 }
 0x2ed   :  { %1206 = vrot.lane.b32.xlu1 %v2347_v56, %s1675_s13 }
 0x2ef   :  { %1212 = vrot.lane.b32.xlu0 %v2351_v7, %s1675_s13 }
 0x2f1   :  { %1214 = vrot.lane.b32.xlu1 %v2357_v17, %s1675_s13 }
 0x2f3   :  { %984 = vrot.lane.b32.xlu0 %v2419_v50, %s1668_s28 }
 0x2f5   :  { %986 = vrot.lane.b32.xlu1 %v2423_v48, %s1668_s28 }
 0x2f7   :  { %992 = vrot.lane.b32.xlu0 %v2427_v4, %s1668_s28 }
 0x2f9   :  { %994 = vrot.lane.b32.xlu1 %v2431_v45, %s1668_s28 }
 0x2fb   :  { %1016 = vrot.lane.b32.xlu0 %v2419_v50, %s1669_s29 }
 0x2fd   :  { %1018 = vrot.lane.b32.xlu1 %v2423_v48, %s1669_s29 }
 0x2ff   :  { %1024 = vrot.lane.b32.xlu0 %v2427_v4, %s1669_s29 }
 0x301   :  { %1026 = vrot.lane.b32.xlu1 %v2431_v45, %s1669_s29 }
 0x303   :  { %1048 = vrot.lane.b32.xlu0 %v2419_v50, %s1670_s30 }
 0x305   :  { %1050 = vrot.lane.b32.xlu1 %v2423_v48, %s1670_s30 }
 0x307   :  { %1056 = vrot.lane.b32.xlu0 %v2427_v4, %s1670_s30 }
 0x309   :  { %1058 = vrot.lane.b32.xlu1 %v2431_v45, %s1670_s30 }
 0x30b   :  { %1080 = vrot.lane.b32.xlu0 %v2419_v50, %s1671_s9 }
 0x30d   :  { %1082 = vrot.lane.b32.xlu1 %v2423_v48, %s1671_s9 }
 0x30f   :  { %1088 = vrot.lane.b32.xlu0 %v2427_v4, %s1671_s9 }
 0x311   :  { %1090 = vrot.lane.b32.xlu1 %v2431_v45, %s1671_s9 }
 0x313   :  { %1112 = vrot.lane.b32.xlu0 %v2419_v50, %s1672_s10 }
 0x315   :  { %1114 = vrot.lane.b32.xlu1 %v2423_v48, %s1672_s10 }
 0x317   :  { %1120 = vrot.lane.b32.xlu0 %v2427_v4, %s1672_s10 }
 0x319   :  { %1122 = vrot.lane.b32.xlu1 %v2431_v45, %s1672_s10 }
 0x31b   :  { %1144 = vrot.lane.b32.xlu0 %v2419_v50, %s1673_s11 }
 0x31d   :  { %1146 = vrot.lane.b32.xlu1 %v2423_v48, %s1673_s11 }
 0x31f   :  { %1152 = vrot.lane.b32.xlu0 %v2427_v4, %s1673_s11 }
 0x321   :  { %1154 = vrot.lane.b32.xlu1 %v2431_v45, %s1673_s11 }
 0x323   :  { %1176 = vrot.lane.b32.xlu0 %v2419_v50, %s1674_s12 }
 0x325   :  { %v2479_v53 = vpop.permute.xlu0 %980  ;;  %1178 = vrot.lane.b32.xlu1 %v2423_v48, %s1674_s12 }
 0x327   :  { %1184 = vrot.lane.b32.xlu0 %v2427_v4, %s1674_s12  ;;  %v2485_v58 = vpop.permute.xlu1 %982 }
 0x329   :  { %v2490_v55 = vpop.permute.xlu0 %988  ;;  %1186 = vrot.lane.b32.xlu1 %v2431_v45, %s1674_s12 }
 0x32b   :  { %1208 = vrot.lane.b32.xlu0 %v2419_v50, %s1675_s13  ;;  %v2498_v63 = vpop.permute.xlu1 %990 }
 0x32d   :  { %v2500_v8 = vpop.permute.xlu0 %1012  ;;  %1210 = vrot.lane.b32.xlu1 %v2423_v48, %s1675_s13 }
 0x32f   :  { %1216 = vrot.lane.b32.xlu0 %v2427_v4, %s1675_s13  ;;  %v2506_v47 = vpop.permute.xlu1 %1014 }
 0x331   :  { %v2511_v31 = vpop.permute.xlu0 %1020  ;;  %1218 = vrot.lane.b32.xlu1 %v2431_v45, %s1675_s13 }
 0x333   :  { %72 = vperm.xlu0 %1654, %v46_v33   ;;  %v2518_v23 = vpop.permute.xlu1 %1022  ;;  %v58_v33 = vld [vmem:[%s2974_s3 + $0x60] sm:$0xff] }
 0x335   :  { %v2523_v39 = vpop.permute.xlu0 %1044  ;;  %580 = vperm.xlu1 %1655, %v53_v62  }
 0x337   :  { %585 = vperm.xlu0 %1654, %v54_v2   ;;  %v2528_v37 = vpop.permute.xlu1 %1046  ;;  %v50_v2 = vld [vmem:[%s2974_s3 + $0x20] sm:$0xff] }
 0x339   :  { %v2533_v54 = vpop.permute.xlu0 %1052  ;;  %1274 = vperm.xlu1 %1655, %v57_v3  }
 0x33b   :  { %1279 = vperm.xlu0 %1654, %v58_v33   ;;  %v2538_v62 = vpop.permute.xlu1 %1054  ;;  %v52_v33 = vld [vmem:[%s2974_s3 + $0x30] sm:$0xff] }
 0x33d   :  { %v2543_v38 = vpop.permute.xlu0 %1076  ;;  %87 = vperm.xlu1 %1655, %v49_v40  }
 0x33f   :  { %92 = vperm.xlu0 %1654, %v50_v2   ;;  %v2548_v3 = vpop.permute.xlu1 %1078  ;;  %v60_v2 = vld [vmem:[%s2974_s3 + $0x70] sm:$0xff] }
 0x341   :  { %v2553_v21 = vpop.permute.xlu0 %1084  ;;  %97 = vperm.xlu1 %1655, %v51_v52  }
 0x343   :  { %102 = vperm.xlu0 %1654, %v52_v33   ;;  %v2558_v40 = vpop.permute.xlu1 %1086  ;;  %v62_v33 = vld [vmem:[%s2974_s3 + $0x80] sm:$0xff] }
 0x345   :  { %v2563_v20 = vpop.permute.xlu0 %1108  ;;  %1406 = vperm.xlu1 %1655, %v59_v19  }
 0x347   :  { %1411 = vperm.xlu0 %1654, %v60_v2   ;;  %v2568_v52 = vpop.permute.xlu1 %1110 }
 0x349   :  { %v2573_v28 = vpop.permute.xlu0 %1116  ;;  %1416 = vperm.xlu1 %1655, %v61_v18  }
 0x34b   :  { %1421 = vperm.xlu0 %1654, %v62_v33   ;;  %v2575_v32 = vpop.permute.xlu1 %1118 }
 0x34d   :  { %v2577_v14 = vpop.permute.xlu0 %1140 }
 0x34f   :  { %v2579_v19 = vpop.permute.xlu1 %1142 }
 0x350   :  { %3061 = vst [vmem:[#allocation43_spill] sm:$0xff] %v2579_v19 }
 0x351   :  { %v2581_v60 = vpop.permute.xlu0 %1148 }
 0x353   :  { %v2583_v36 = vpop.permute.xlu1 %1150 }
 0x354   :  { %3062 = vst [vmem:[#allocation44_spill] sm:$0xff] %v2583_v36 }
 0x355   :  { %v2585_v2 = vpop.permute.xlu0 %1172 }
 0x356   :  { %3063 = vst [vmem:[#allocation45_spill] sm:$0xff] %v2585_v2 }
 0x357   :  { %v2587_v59 = vpop.permute.xlu1 %1174 }
 0x358   :  { %3064 = vst [vmem:[#allocation46_spill] sm:$0xff] %v2587_v59 }
 0x359   :  { %v2589_v51 = vpop.permute.xlu0 %1180 }
 0x35a   :  { %3065 = vst [vmem:[#allocation47_spill] sm:$0xff] %v2589_v51 }
 0x35b   :  { %v2591_v41 = vpop.permute.xlu1 %1182 }
 0x35c   :  { %3066 = vst [vmem:[#allocation48_spill] sm:$0xff] %v2591_v41 }
 0x35d   :  { %v2593_v18 = vpop.permute.xlu0 %1204 }
 0x35e   :  { %3067 = vst [vmem:[#allocation49_spill] sm:$0xff] %v2593_v18 }
 0x35f   :  { %v2595_v33 = vpop.permute.xlu1 %1206 }
 0x360   :  { %3068 = vst [vmem:[#allocation50_spill] sm:$0xff] %v2595_v33 }
 0x361   :  { %v2597_v30 = vpop.permute.xlu0 %1212 }
 0x362   :  { %3069 = vst [vmem:[#allocation51_spill] sm:$0xff] %v2597_v30 }
 0x363   :  { %v2599_v46 = vpop.permute.xlu1 %1214 }
 0x364   :  { %3070 = vst [vmem:[#allocation52_spill] sm:$0xff] %v2599_v46 }
 0x365   :  { %v985_v43 = vpop.permute.xlu0 %984 }
 0x366   :  { %v998_v29 = vsel %vm302_vm1, %v985_v43, %v2490_v55  ;;  %v1000_v59 = vsel %vm302_vm1, %v2479_v53, %v985_v43 }
 0x367   :  { %v987_v2 = vpop.permute.xlu1 %986  ;;  %v1005_v46 = vmul.f32 %v1000_v59, %v1965_v5  ;;  %v1006_v30 = vmul.f32 %v998_v29, %v2006_v25 }
 0x368   :  { %v999_v18 = vsel %vm302_vm1, %v987_v2, %v2498_v63  ;;  %v1001_v33 = vsel %vm302_vm1, %v2485_v58, %v987_v2 }
 0x369   :  { %v1009_v41 = vmul.f32 %v1001_v33, %v1965_v5  ;;  %v1010_v51 = vmul.f32 %v999_v18, %v2006_v25  ;;  %v993_v19 = vpop.permute.xlu0 %992 }
 0x36a   :  { %v996_v43 = vsel %vm302_vm1, %v2490_v55, %v993_v19  ;;  %v1002_v36 = vsel %vm302_vm1, %v993_v19, %v2479_v53 }
 0x36b   :  { %v1238_v26 = vpack.c.bf16 %v1010_v51, %v1006_v30  ;;  %v995_v7 = vpop.permute.xlu1 %994  ;;  %v1237_v2 = vpack.c.bf16 %v1009_v41, %v1005_v46  ;;  %v1004_v25 = vmul.f32 %v1002_v36, %v1981_v9  ;;  %v1007_v59 = vmul.f32 %v996_v43, %v1984_v10 }
 0x36c   :  { %v997_v29 = vsel %vm302_vm1, %v2498_v63, %v995_v7  ;;  %v1003_v5 = vsel %vm302_vm1, %v995_v7, %v2485_v58 }
 0x36d   :  { %v1008_v55 = vmul.f32 %v1003_v5, %v1981_v9  ;;  %v1011_v18 = vmul.f32 %v997_v29, %v1984_v10  ;;  %v1017_v53 = vpop.permute.xlu0 %1016  ;;  %1294 = vmatprep.subr.bf16.mxu0 %v1237_v2 }
 0x36e   :  { %v1030_v30 = vsel %vm335_vm2, %v1017_v53, %v2511_v31  ;;  %v1032_v41 = vsel %vm335_vm2, %v2500_v8, %v1017_v53 }
 0x36f   :  { %v1236_v46 = vpack.c.bf16 %v1008_v55, %v1004_v25  ;;  %v1019_v51 = vpop.permute.xlu1 %1018  ;;  %v1239_v7 = vpack.c.bf16 %v1011_v18, %v1007_v59  ;;  %v1037_v36 = vmul.f32 %v1032_v41, %v1971_v6  ;;  %v1038_v58 = vmul.f32 %v1030_v30, %v1987_v13 }
 0x370   :  { %v1031_v9 = vsel %vm335_vm2, %v1019_v51, %v2518_v23  ;;  %v1033_v10 = vsel %vm335_vm2, %v2506_v47, %v1019_v51 }
 0x371   :  { %v1041_v63 = vmul.f32 %v1033_v10, %v1971_v6  ;;  %v1042_v19 = vmul.f32 %v1031_v9, %v1987_v13  ;;  %v1025_v33 = vpop.permute.xlu0 %1024  ;;  %1295 = vmatpush1.bf16.msra.mxu0 %v1236_v46  ;;  %1337 = vmatprep.subr.bf16.mxu1 %v1239_v7 }
 0x372   :  { %v1028_v43 = vsel %vm335_vm2, %v2511_v31, %v1025_v33  ;;  %v1034_v2 = vsel %vm335_vm2, %v1025_v33, %v2500_v8  ;;  %1338 = vmatpush1.bf16.msra.mxu1 %v1238_v26 }
 0x373   :  { %v1242_v29 = vpack.c.bf16 %v1042_v19, %v1038_v58  ;;  %v1027_v5 = vpop.permute.xlu1 %1026  ;;  %v1241_v25 = vpack.c.bf16 %v1041_v63, %v1037_v36  ;;  %v1036_v59 = vmul.f32 %v1034_v2, %v1992_v15  ;;  %v1039_v31 = vmul.f32 %v1028_v43, %v1995_v16 }
 0x374   :  { %v1029_v6 = vsel %vm335_vm2, %v2518_v23, %v1027_v5  ;;  %v1035_v13 = vsel %vm335_vm2, %v1027_v5, %v2506_v47 }
 0x375   :  { %v1040_v55 = vmul.f32 %v1035_v13, %v1992_v15  ;;  %v1043_v8 = vmul.f32 %v1029_v6, %v1995_v16  ;;  %v1049_v26 = vpop.permute.xlu0 %1048  ;;  %1296 = vmatprep.subr.bf16.mxu0 %v1241_v25 }
 0x376   :  { %v1062_v18 = vsel %vm368_vm3, %v1049_v26, %v2533_v54  ;;  %v1064_v23 = vsel %vm368_vm3, %v2523_v39, %v1049_v26 }
 0x377   :  { %v1240_v53 = vpack.c.bf16 %v1040_v55, %v1036_v59  ;;  %v1051_v47 = vpop.permute.xlu1 %1050  ;;  %v1243_v30 = vpack.c.bf16 %v1043_v8, %v1039_v31  ;;  %v1069_v41 = vmul.f32 %v1064_v23, %v2029_v0  ;;  %v1070_v46 = vmul.f32 %v1062_v18, %v2060_v35 }
 0x378   :  { %v1063_v15 = vsel %vm368_vm3, %v1051_v47, %v2538_v62  ;;  %v1065_v16 = vsel %vm368_vm3, %v2528_v37, %v1051_v47 }
 0x379   :  { %v1073_v51 = vmul.f32 %v1065_v16, %v2029_v0  ;;  %v1074_v7 = vmul.f32 %v1063_v15, %v2060_v35  ;;  %v1057_v36 = vpop.permute.xlu0 %1056  ;;  %1297 = vmatpush1.bf16.msra.mxu0 %v1240_v53  ;;  %1339 = vmatprep.subr.bf16.mxu1 %v1243_v30 }
 0x37a   :  { %v1060_v9 = vsel %vm368_vm3, %v2533_v54, %v1057_v36  ;;  %v1066_v10 = vsel %vm368_vm3, %v1057_v36, %v2523_v39  ;;  %1340 = vmatpush1.bf16.msra.mxu1 %v1242_v29 }
 0x37b   :  { %v1246_v58 = vpack.c.bf16 %v1074_v7, %v1070_v46  ;;  %v1059_v63 = vpop.permute.xlu1 %1058  ;;  %v1245_v19 = vpack.c.bf16 %v1073_v51, %v1069_v41  ;;  %v1068_v33 = vmul.f32 %v1066_v10, %v2038_v11  ;;  %v1071_v54 = vmul.f32 %v1060_v9, %v2042_v22 }
 0x37c   :  { %v1061_v0 = vsel %vm368_vm3, %v2538_v62, %v1059_v63  ;;  %v1067_v35 = vsel %vm368_vm3, %v1059_v63, %v2528_v37 }
 0x37d   :  { %v1072_v43 = vmul.f32 %v1067_v35, %v2038_v11  ;;  %v1075_v39 = vmul.f32 %v1061_v0, %v2042_v22  ;;  %v1081_v2 = vpop.permute.xlu0 %1080  ;;  %1298 = vmatprep.subr.bf16.mxu0 %v1245_v19 }
 0x37e   :  { %v1094_v29 = vsel %vm401_vm4, %v1081_v2, %v2553_v21  ;;  %v1096_v62 = vsel %vm401_vm4, %v2543_v38, %v1081_v2 }
 0x37f   :  { %v1244_v5 = vpack.c.bf16 %v1072_v43, %v1068_v33  ;;  %v1083_v37 = vpop.permute.xlu1 %1082  ;;  %v1247_v25 = vpack.c.bf16 %v1075_v39, %v1071_v54  ;;  %v1101_v6 = vmul.f32 %v1096_v62, %v2033_v1  ;;  %v1102_v13 = vmul.f32 %v1094_v29, %v2045_v24  ;;  %v3072_v54 = vld [vmem:[#allocation42_spill] sm:$0xff] }
 0x380   :  { %v1095_v11 = vsel %vm401_vm4, %v1083_v37, %v2558_v40  ;;  %v1097_v22 = vsel %vm401_vm4, %v2548_v3, %v1083_v37  ;;  %v3073_v43 = vpack.c.bf16 %v2357_v17, %v3072_v54  ;;  %v3074_v29 = vld [vmem:[#allocation10_spill] sm:$0xff]  ;;  %v3088_v54 = vld [vmem:[#allocation51_spill] sm:$0xff] }
 0x381   :  { %v1105_v59 = vmul.f32 %v1097_v22, %v2033_v1  ;;  %v1106_v31 = vmul.f32 %v1095_v11, %v2045_v24  ;;  %v1089_v55 = vpop.permute.xlu0 %1088  ;;  %1299 = vmatpush1.bf16.msra.mxu0 %v1244_v5  ;;  %1341 = vmatprep.subr.bf16.mxu1 %v1247_v25  ;;  %v3076_v5 = vld [vmem:[#allocation43_spill] sm:$0xff] }
 0x382   :  { %v1092_v8 = vsel %vm401_vm4, %v2553_v21, %v1089_v55  ;;  %v1098_v26 = vsel %vm401_vm4, %v1089_v55, %v2543_v38  ;;  %1342 = vmatpush1.bf16.msra.mxu1 %v1246_v58  ;;  %v3077_v25 = vld [vmem:[#allocation11_spill] sm:$0xff] }
 0x383   :  { %v1250_v18 = vpack.c.bf16 %v1106_v31, %v1102_v13  ;;  %v1091_v23 = vpop.permute.xlu1 %1090  ;;  %v1249_v53 = vpack.c.bf16 %v1105_v59, %v1101_v6  ;;  %v1100_v47 = vmul.f32 %v1098_v26, %v2050_v27  ;;  %v1103_v21 = vmul.f32 %v1092_v8, %v2057_v34 }
 0x384   :  { %v1093_v1 = vsel %vm401_vm4, %v2558_v40, %v1091_v23  ;;  %v1099_v24 = vsel %vm401_vm4, %v1091_v23, %v2548_v3  ;;  %v3078_v23 = vld [vmem:[#allocation14_spill] sm:$0xff] }
 0x385   :  { %v1104_v30 = vmul.f32 %v1099_v24, %v2050_v27  ;;  %v1107_v38 = vmul.f32 %v1093_v1, %v2057_v34  ;;  %v1113_v41 = vpop.permute.xlu0 %1112  ;;  %1300 = vmatprep.subr.bf16.mxu0 %v1249_v53  ;;  %v1253_v27 = vpack.c.bf16 %v2423_v48, %v2419_v50  ;;  %v1255_v34 = vpack.c.bf16 %v2431_v45, %v2427_v4  ;;  %v3079_v1 = vld [vmem:[#allocation15_spill] sm:$0xff] }
 0x386   :  { %v1126_v15 = vsel %vm434_vm5, %v1113_v41, %v2573_v28  ;;  %v1128_v7 = vsel %vm434_vm5, %v2563_v20, %v1113_v41 }
 0x387   :  { %v1248_v16 = vpack.c.bf16 %v1104_v30, %v1100_v47  ;;  %v1115_v40 = vpop.permute.xlu1 %1114  ;;  %v1251_v46 = vpack.c.bf16 %v1107_v38, %v1103_v21  ;;  %v1133_v36 = vmul.f32 %v1126_v15, %v2078_v12  ;;  %v3080_v21 = vld [vmem:[#allocation47_spill] sm:$0xff]  ;;  %v3081_v38 = vld [vmem:[#allocation45_spill] sm:$0xff] }
 0x388   :  { %v1127_v3 = vsel %vm434_vm5, %v1115_v40, %v2575_v32  ;;  %v1129_v51 = vsel %vm434_vm5, %v2568_v52, %v1115_v40 }
 0x389   :  { %v1137_v9 = vmul.f32 %v1127_v3, %v2078_v12  ;;  %v1121_v10 = vpop.permute.xlu0 %1120  ;;  %1301 = vmatpush1.bf16.msra.mxu0 %v1248_v16  ;;  %1343 = vmatprep.subr.bf16.mxu1 %v1251_v46  ;;  %v1136_v48 = vmul.f32 %v1129_v51, %v2070_v49  ;;  %v1132_v12 = vmul.f32 %v1128_v7, %v2070_v49  ;;  %v3082_v46 = vld [vmem:[#allocation48_spill] sm:$0xff]  ;;  %v3083_v51 = vld [vmem:[#allocation46_spill] sm:$0xff] }
 0x38a   :  { %v1124_v58 = vsel %vm434_vm5, %v2573_v28, %v1121_v10  ;;  %v1130_v50 = vsel %vm434_vm5, %v1121_v10, %v2563_v20  ;;  %1302 = vmatprep.subr.bf16.mxu0 %v1253_v27  ;;  %1344 = vmatpush1.bf16.msra.mxu1 %v1250_v18  ;;  %v3071_v49 = vpack.c.bf16 %v2347_v56, %v2345_v61  ;;  %v3075_v61 = vld [vmem:[#allocation44_spill] sm:$0xff] }
 0x38b   :  { %1345 = vmatprep.subr.bf16.mxu1 %v1255_v34  ;;  %v1123_v4 = vpop.permute.xlu1 %1122  ;;  %v1257_v45 = vpack.c.bf16 %v1137_v9, %v1133_v36  ;;  %v1134_v19 = vmul.f32 %v1124_v58, %v2090_v42  ;;  %v1135_v20 = vmul.f32 %v1130_v50, %v2095_v44  ;;  %v3084_v34 = vld [vmem:[#allocation12_spill] sm:$0xff]  ;;  %v3085_v36 = vld [vmem:[#allocation13_spill] sm:$0xff] }
 0x38c   :  { %v1125_v63 = vsel %vm434_vm5, %v2575_v32, %v1123_v4  ;;  %v1131_v28 = vsel %vm434_vm5, %v1123_v4, %v2568_v52 }
 0x38d   :  { %v1138_v0 = vmul.f32 %v1125_v63, %v2090_v42  ;;  %v1139_v35 = vmul.f32 %v1131_v28, %v2095_v44  ;;  %v1145_v33 = vpop.permute.xlu0 %1144  ;;  %1303 = vmatpush1.bf16.msra.mxu0 %v3071_v49  ;;  %v1256_v42 = vpack.c.bf16 %v1136_v48, %v1132_v12 }
 0x38e   :  { %v1158_v32 = vsel %vm467_vm6, %v1145_v33, %v2581_v60  ;;  %v1160_v52 = vsel %vm467_vm6, %v2577_v14, %v1145_v33  ;;  %1304 = vmatprep.subr.bf16.mxu0 %v1257_v45  ;;  %1346 = vmatpush1.bf16.msra.mxu1 %v3073_v43 }
 0x38f   :  { %v1258_v44 = vpack.c.bf16 %v1138_v0, %v1134_v19  ;;  %v1147_v39 = vpop.permute.xlu1 %1146  ;;  %v1259_v2 = vpack.c.bf16 %v1139_v35, %v1135_v20  ;;  %v1164_v56 = vmul.f32 %v1160_v52, %v3074_v29  ;;  %v1165_v6 = vmul.f32 %v1158_v32, %v3077_v25  ;;  %v3086_v20 = vld [vmem:[#allocation16_spill] sm:$0xff]  ;;  %v3087_v35 = vld [vmem:[#allocation17_spill] sm:$0xff] }
 0x390   :  { %v1159_v62 = vsel %vm467_vm6, %v1147_v39, %v3075_v61  ;;  %v1161_v37 = vsel %vm467_vm6, %v3076_v5, %v1147_v39 }
 0x391   :  { %v1168_v11 = vmul.f32 %v1161_v37, %v3074_v29  ;;  %v1169_v17 = vmul.f32 %v1159_v62, %v3077_v25  ;;  %v1153_v22 = vpop.permute.xlu0 %1152  ;;  %1305 = vmatpush1.bf16.msra.mxu0 %v1256_v42  ;;  %1347 = vmatprep.subr.bf16.mxu1 %v1259_v2  ;;  %v3089_v42 = vld [vmem:[#allocation49_spill] sm:$0xff]  ;;  %v3091_v62 = vld [vmem:[#allocation50_spill] sm:$0xff] }
 0x392   :  { %v1156_v13 = vsel %vm467_vm6, %v2581_v60, %v1153_v22  ;;  %v1162_v59 = vsel %vm467_vm6, %v1153_v22, %v2577_v14  ;;  %1348 = vmatpush1.bf16.msra.mxu1 %v1258_v44  ;;  %v3092_v37 = vld [vmem:[#allocation18_spill] sm:$0xff] }
 0x393   :  { %v1260_v31 = vpack.c.bf16 %v1168_v11, %v1164_v56  ;;  %v1155_v55 = vpop.permute.xlu1 %1154  ;;  %v1261_v8 = vpack.c.bf16 %v1169_v17, %v1165_v6  ;;  %v1166_v53 = vmul.f32 %v1156_v13, %v3078_v23  ;;  %v1167_v60 = vmul.f32 %v1162_v59, %v3079_v1  ;;  %v3090_v56 = vld [vmem:[#allocation52_spill] sm:$0xff]  ;;  %v3093_v6 = vld [vmem:[#allocation19_spill] sm:$0xff] }
 0x394   :  { %v1157_v26 = vsel %vm467_vm6, %v3075_v61, %v1155_v55  ;;  %v1163_v18 = vsel %vm467_vm6, %v1155_v55, %v3076_v5 }
 0x395   :  { %v1170_v24 = vmul.f32 %v1157_v26, %v3078_v23  ;;  %v1171_v14 = vmul.f32 %v1163_v18, %v3079_v1  ;;  %v1177_v47 = vpop.permute.xlu0 %1176  ;;  %1306 = vmatprep.subr.bf16.mxu0 %v1261_v8 }
 0x396   :  { %v1190_v30 = vsel %vm500_vm7, %v1177_v47, %v3080_v21  ;;  %v1192_v41 = vsel %vm500_vm7, %v3081_v38, %v1177_v47  ;;  %1307 = vmatpush1.bf16.msra.mxu0 %v1260_v31 }
 0x397   :  { %v1262_v15 = vpack.c.bf16 %v1170_v24, %v1166_v53  ;;  %v1179_v16 = vpop.permute.xlu1 %1178  ;;  %v1263_v40 = vpack.c.bf16 %v1171_v14, %v1167_v60  ;;  %v1196_v7 = vmul.f32 %v1192_v41, %v3084_v34  ;;  %v1197_v9 = vmul.f32 %v1190_v30, %v3085_v36  ;;  %v3094_v53 = vld [vmem:[#allocation20_spill] sm:$0xff]  ;;  %v3095_v60 = vld [vmem:[#allocation21_spill] sm:$0xff] }
 0x398   :  { %v1191_v3 = vsel %vm500_vm7, %v1179_v16, %v3082_v46  ;;  %v1193_v27 = vsel %vm500_vm7, %v3083_v51, %v1179_v16 }
 0x399   :  { %v1200_v10 = vmul.f32 %v1193_v27, %v3084_v34  ;;  %v1201_v58 = vmul.f32 %v1191_v3, %v3085_v36  ;;  %v1185_v50 = vpop.permute.xlu0 %1184  ;;  %1349 = vmatprep.subr.bf16.mxu1 %v1263_v40  ;;  %v3098_v40 = vld [vmem:[#allocation4_spill] sm:$0xff]  ;;  %v3099_v3 = vld [vmem:[#allocation3_spill] sm:$0xff]  ;;  %v3100_v27 = vld [vmem:[#allocation5_spill] sm:$0xff] }
 0x39a   :  { %v1188_v48 = vsel %vm500_vm7, %v3080_v21, %v1185_v50  ;;  %v1194_v4 = vsel %vm500_vm7, %v1185_v50, %v3081_v38  ;;  %1350 = vmatpush1.bf16.msra.mxu1 %v1262_v15  ;;  %v1664_v21 = vld [vmem:[%s2978_s6] ss:$8 sps:$4 sm:$0xff]  }
 0x39b   :  { %v1264_v45 = vpack.c.bf16 %v1200_v10, %v1196_v7  ;;  %v1187_v12 = vpop.permute.xlu1 %1186  ;;  %v1265_v63 = vpack.c.bf16 %v1201_v58, %v1197_v9  ;;  %v1198_v0 = vmul.f32 %v1188_v48, %v3086_v20  ;;  %v1199_v33 = vmul.f32 %v1194_v4, %v3087_v35  ;;  %v3097_v15 = vld [vmem:[#allocation2_spill] sm:$0xff]  ;;  %v3102_v10 = vld [vmem:[#allocation35_spill] sm:$0xff] }
 0x39c   :  { %v1189_v28 = vsel %vm500_vm7, %v3082_v46, %v1187_v12  ;;  %v1195_v19 = vsel %vm500_vm7, %v1187_v12, %v3083_v51  ;;  %v3101_v36 = vld [vmem:[#allocation34_spill] sm:$0xff]  ;;  %v3104_v4 = vld [vmem:[#allocation39_spill] sm:$0xff] }
 0x39d   :  { %v1202_v49 = vmul.f32 %v1189_v28, %v3086_v20  ;;  %v1203_v32 = vmul.f32 %v1195_v19, %v3087_v35  ;;  %v1209_v52 = vpop.permute.xlu0 %1208  ;;  %1308 = vmatprep.subr.bf16.mxu0 %v1265_v63  ;;  %v3103_v50 = vld [vmem:[#allocation38_spill] sm:$0xff] }
 0x39e   :  { %v1222_v43 = vsel %vm533_vm8, %v1209_v52, %v3088_v54  ;;  %v1224_v44 = vsel %vm533_vm8, %v3089_v42, %v1209_v52  ;;  %1309 = vmatpush1.bf16.msra.mxu0 %v1264_v45 }
 0x39f   :  { %v1266_v39 = vpack.c.bf16 %v1202_v49, %v1198_v0  ;;  %v1211_v2 = vpop.permute.xlu1 %1210  ;;  %v1267_v29 = vpack.c.bf16 %v1203_v32, %v1199_v33  ;;  %v1228_v25 = vmul.f32 %v1224_v44, %v3092_v37  ;;  %v1229_v11 = vmul.f32 %v1222_v43, %v3093_v6 }
 0x3a0   :  { %v1223_v61 = vsel %vm533_vm8, %v1211_v2, %v3090_v56  ;;  %v1225_v5 = vsel %vm533_vm8, %v3091_v62, %v1211_v2 }
 0x3a1   :  { %v1232_v17 = vmul.f32 %v1225_v5, %v3092_v37  ;;  %v1233_v22 = vmul.f32 %v1223_v61, %v3093_v6  ;;  %v1217_v13 = vpop.permute.xlu0 %1216  ;;  %1351 = vmatprep.subr.bf16.mxu1 %v1267_v29  ;;  %v3106_v29 = vld [vmem:[#allocation37_spill] sm:$0xff]  ;;  %v3107_v6 = vld [vmem:[#allocation40_spill] sm:$0xff] }
 0x3a2   :  { %v1220_v59 = vsel %vm533_vm8, %v3088_v54, %v1217_v13  ;;  %v1226_v31 = vsel %vm533_vm8, %v1217_v13, %v3089_v42  ;;  %1352 = vmatpush1.bf16.msra.mxu1 %v1266_v39  ;;  %v3105_v42 = vld [vmem:[#allocation36_spill] sm:$0xff] }
 0x3a3   :  { %v1268_v55 = vpack.c.bf16 %v1232_v17, %v1228_v25  ;;  %v1219_v8 = vpop.permute.xlu1 %1218  ;;  %v1269_v26 = vpack.c.bf16 %v1233_v22, %v1229_v11  ;;  %v1230_v1 = vmul.f32 %v1220_v59, %v3094_v53  ;;  %v1231_v24 = vmul.f32 %v1226_v31, %v3095_v60  ;;  %v3108_v31 = vld [vmem:[#allocation41_spill] sm:$0xff] }
 0x3a4   :  { %v1221_v18 = vsel %vm533_vm8, %v3090_v56, %v1219_v8  ;;  %v1227_v23 = vsel %vm533_vm8, %v1219_v8, %v3091_v62 }
 0x3a5   :  { %v1234_v14 = vmul.f32 %v1221_v18, %v3094_v53  ;;  %v1235_v47 = vmul.f32 %v1227_v23, %v3095_v60  ;;  %1310 = vmatprep.subr.bf16.mxu0 %v1269_v26 }
 0x3a6   :  { %1311 = vmatpush1.bf16.msra.mxu0 %v1268_v55 }
 0x3a7   :  { %v1270_v30 = vpack.c.bf16 %v1234_v14, %v1230_v1  ;;  %v1271_v38 = vpack.c.bf16 %v1235_v47, %v1231_v24 }
 0x3a9   :  { %1327 = vmatmul.mubr.bf16.vlgmr.msra.gmra.mrb[24].mxu0 %v1664_v21  ;;  %1353 = vmatprep.subr.bf16.mxu1 %v1271_v38 }
 0x3aa   :  { %1354 = vmatpush1.bf16.msra.mxu1 %v1270_v30  ;;  %1485 = vmatprep.mubr.bf16.mxu0 %v3096_v57 }
 0x3ad   :  { %1370 = vmatmul.mubr.bf16.vlgmr.msra.gmra.mrb[24].mxu1 %v1664_v21 }
 0x3ae   :  { %1538 = vmatprep.mubr.bf16.mxu1 %v3096_v57 }
 0x3b2   :  { %v73_v41 = vpop.permute.xlu0 %72 }
 0x3b3   :  { %v171_v16 = vadd.f32 %v3097_v15, %v73_v41  ;;  %v173_v46 = vadd.f32 %v3098_v40, %v73_v41  ;;  %v242_v51 = vadd.f32 %v3099_v3, %v73_v41  ;;  %v244_v34 = vadd.f32 %v3100_v27, %v73_v41 }
 0x3b4   :  { %v581_v7 = vpop.permute.xlu1 %580 }
 0x3b5   :  { %v645_v9 = vadd.f32 %v3101_v36, %v581_v7  ;;  %v647_v58 = vadd.f32 %v3102_v10, %v581_v7  ;;  %v688_v48 = vadd.f32 %v3103_v50, %v581_v7  ;;  %v690_v45 = vadd.f32 %v3104_v4, %v581_v7 }
 0x3b6   :  { %v278_v12 = vmax.f32 %v171_v16, 0.0  ;;  %v279_v28 = vmax.f32 %v173_v46, 0.0  ;;  %v280_v20 = vmax.f32 %v242_v51, 0.0  ;;  %v281_v35 = vmax.f32 %v244_v34, 0.0  ;;  %v586_v43 = vpop.permute.xlu0 %585 }
 0x3b7   :  { %v696_v63 = vmax.f32 %v645_v9, 0.0  ;;  %v697_v19 = vmax.f32 %v647_v58, 0.0  ;;  %v698_v0 = vmax.f32 %v688_v48, 0.0  ;;  %v699_v33 = vmax.f32 %v690_v45, 0.0  ;;  %v1665_v48 = vld [vmem:[%s2979_s7] sm:$0xff]   ;;  %v1666_v45 = vld [vmem:[%s2979_s7 + $0x8] sm:$0xff]  }
 0x3b8   :  { %v649_v44 = vadd.f32 %v3105_v42, %v586_v43  ;;  %v1275_v39 = vpop.permute.xlu1 %1274  ;;  %v651_v56 = vadd.f32 %v3106_v29, %v586_v43  ;;  %v692_v11 = vadd.f32 %v3107_v6, %v586_v43  ;;  %v694_v55 = vadd.f32 %v3108_v31, %v586_v43 }
 0x3b9   :  { %v1389_v49 = vpack.c.bf16 %v697_v19, %v279_v28  ;;  %v1388_v32 = vpack.c.bf16 %v696_v63, %v278_v12  ;;  %v1391_v52 = vpack.c.bf16 %v699_v33, %v281_v35  ;;  %v1390_v54 = vpack.c.bf16 %v698_v0, %v280_v20  ;;  %v3109_v35 = vld [vmem:[#allocation6_spill] sm:$0xff] }
 0x3ba   :  { %v1280_v5 = vpop.permute.xlu0 %1279  ;;  %v700_v17 = vmax.f32 %v649_v44, 0.0  ;;  %v701_v8 = vmax.f32 %v651_v56, 0.0  ;;  %v702_v38 = vmax.f32 %v692_v11, 0.0  ;;  %v703_v15 = vmax.f32 %v694_v55, 0.0 }
 0x3bb   :  { %1453 = vmatprep.subr.bf16.mxu0 %v1389_v49  ;;  %1506 = vmatprep.subr.bf16.mxu1 %v1391_v52 }
 0x3bc   :  { %1454 = vmatpush1.bf16.msra.mxu0 %v1388_v32  ;;  %1507 = vmatpush1.bf16.msra.mxu1 %v1390_v54  ;;  %v88_v12 = vpop.permute.xlu1 %87  ;;  %v3110_v54 = vld [vmem:[#allocation7_spill] sm:$0xff] }
 0x3bd   :  { %v185_v33 = vadd.f32 %v3109_v35, %v88_v12  ;;  %v187_v43 = vadd.f32 %v3110_v54, %v88_v12 }
 0x3be   :  { %v93_v63 = vpop.permute.xlu0 %92 }
 0x3c0   :  { %v2896_v28 = vpop.permute.xlu1 %97 }
 0x3c2   :  { %v2898_v19 = vpop.permute.xlu0 %102 }
 0x3c4   :  { %v1407_v20 = vpop.permute.xlu1 %1406 }
 0x3c6   :  { %v1412_v52 = vpop.permute.xlu0 %1411 }
 0x47c   :  { %v1328_v2 = vpop.f32.mrb[24].mxu0 }
 0x47d   :  { %v1329_v61 = vadd.f32 %v1328_v2, %v1275_v39  ;;  %v1330_v62 = vpop.f32.mrb[25].mxu0 }
 0x47e   :  { %v1331_v37 = vadd.f32 %v1330_v62, %v1275_v39  ;;  %v1332_v25 = vpop.f32.mrb[26].mxu0  ;;  %v3112_v62 = vld [vmem:[#allocation23_spill] sm:$0xff] }
 0x47f   :  { %v1380_v22 = vmax.f32 %v1329_v61, 0.0  ;;  %v1333_v13 = vadd.f32 %v1332_v25, %v1280_v5  ;;  %v1334_v59 = vpop.f32.mrb[27].mxu0 }
 0x480   :  { %v1381_v26 = vmax.f32 %v1331_v37, 0.0  ;;  %v1335_v18 = vadd.f32 %v1334_v59, %v1280_v5  ;;  %v1371_v23 = vpop.f32.mrb[24].mxu1 }
 0x481   :  { %v1392_v53 = vpack.c.bf16 %v1380_v22, %v700_v17  ;;  %v1384_v1 = vmax.f32 %v1333_v13, 0.0  ;;  %v1372_v60 = vadd.f32 %v1371_v23, %v1275_v39  ;;  %v1373_v24 = vpop.f32.mrb[25].mxu1  ;;  %v3113_v17 = vld [vmem:[#allocation8_spill] sm:$0xff] }
 0x482   :  { %v1393_v14 = vpack.c.bf16 %v1381_v26, %v701_v8  ;;  %v1385_v47 = vmax.f32 %v1335_v18, 0.0  ;;  %v1374_v21 = vadd.f32 %v1373_v24, %v1275_v39  ;;  %v1375_v30 = vpop.f32.mrb[26].mxu1  ;;  %v3111_v39 = vld [vmem:[#allocation22_spill] sm:$0xff]  ;;  %v256_v22 = vadd.f32 %v3113_v17, %v88_v12  ;;  %v3114_v8 = vld [vmem:[#allocation9_spill] sm:$0xff]  ;;  %v3123_v17 = vld [vmem:[#allocation32_spill] sm:$0xff] }
 0x483   :  { %v1382_v41 = vmax.f32 %v1372_v60, 0.0  ;;  %v1376_v16 = vadd.f32 %v1375_v30, %v1280_v5  ;;  %v1377_v40 = vpop.f32.mrb[27].mxu1  ;;  %v1396_v46 = vpack.c.bf16 %v1384_v1, %v1384_v1  ;;  %v191_v2 = vadd.f32 %v3111_v39, %v93_v63  ;;  %v3115_v60 = vld [vmem:[#allocation24_spill] sm:$0xff] }
 0x484   :  { %v1397_v3 = vpack.c.bf16 %v1385_v47, %v1385_v47  ;;  %v1383_v51 = vmax.f32 %v1374_v21, 0.0  ;;  %v1378_v27 = vadd.f32 %v1377_v40, %v1280_v5  ;;  %1455 = vmatprep.subr.bf16.mxu0 %v1393_v14  ;;  %v193_v5 = vadd.f32 %v3112_v62, %v93_v63  ;;  %v1417_v21 = vpop.permute.xlu1 %1416  ;;  %v3122_v62 = vld [vmem:[#allocation29_spill] sm:$0xff] }
 0x485   :  { %v1394_v34 = vpack.c.bf16 %v1382_v41, %v702_v38  ;;  %v1386_v7 = vmax.f32 %v1376_v16, 0.0  ;;  %1456 = vmatpush1.bf16.msra.mxu0 %v1392_v53  ;;  %v1442_v50 = vsel %vm597_vm9, %v1396_v46, 0  ;;  %v258_v26 = vadd.f32 %v3114_v8, %v88_v12  ;;  %v3116_v41 = vld [vmem:[#allocation26_spill] sm:$0xff] }
 0x486   :  { %v1395_v36 = vpack.c.bf16 %v1383_v51, %v703_v15  ;;  %v1387_v9 = vmax.f32 %v1378_v27, 0.0  ;;  %1639 = vmatprep.subr.msk.bf16.mxu0 %vm597_vm9, %v1397_v3  ;;  %v262_v24 = vadd.f32 %v3115_v60, %v93_v63  ;;  %v264_v15 = vadd.f32 %v3116_v41, %v93_v63  ;;  %v3117_v51 = vld [vmem:[#allocation25_spill] sm:$0xff]  ;;  %v3119_v63 = vld [vmem:[#allocation30_spill] sm:$0xff] }
 0x487   :  { %v1398_v10 = vpack.c.bf16 %v1386_v7, %v1386_v7  ;;  %v195_v27 = vadd.f32 %v3117_v51, %v2896_v28 }
 0x488   :  { %v1399_v58 = vpack.c.bf16 %v1387_v9, %v1387_v9  ;;  %1508 = vmatprep.subr.bf16.mxu1 %v1395_v36  ;;  %v1422_v36 = vpop.permute.xlu0 %1421 }
 0x489   :  { %1458 = vmatpush1.bf16.msra.mxu0 %v1442_v50  ;;  %1509 = vmatpush1.bf16.msra.mxu1 %v1394_v34  ;;  %v1448_v4 = vsel %vm597_vm9, %v1398_v10, 0 }
 0x48a   :  { %1642 = vmatprep.subr.msk.bf16.mxu1 %vm597_vm9, %v1399_v58  ;;  %v3118_v58 = vld [vmem:[#allocation27_spill] sm:$0xff] }
 0x48b   :  { %v197_v50 = vadd.f32 %v3118_v58, %v2896_v28 }
 0x48c   :  { %1640 = vmatmul.mubr.msk.bf16.vlgmr.msra.gmra.mrb[28].mxu0 %vm1434_vm11, %v1665_v48 }
 0x48d   :  { %1511 = vmatpush1.bf16.msra.mxu1 %v1448_v4  ;;  %1495 = vmatprep.mubr.bf16.mxu0 %v3096_v57 }
 0x490   :  { %1643 = vmatmul.mubr.msk.bf16.vlgmr.msra.gmra.mrb[28].mxu1 %vm1434_vm11, %v1665_v48 }
 0x491   :  { %1548 = vmatprep.mubr.bf16.mxu1 %v3096_v57 }
 0x494   :  { %1641 = vmatmul.mubr.msk.bf16.gmra.mrb[32].mxu0 %vm1434_vm11, %v1666_v45 }
 0x498   :  { %1644 = vmatmul.mubr.msk.bf16.gmra.mrb[32].mxu1 %vm1434_vm11, %v1666_v45 }
 0x55f   :  { %v1487_v0 = vpop.f32.mrb[28].mxu0 }
 0x560   :  { %v1488_v49 = vadd.f32 %v1487_v0, %v1407_v20  ;;  %v1489_v32 = vpop.f32.mrb[29].mxu0 }
 0x561   :  { %v1490_v42 = vadd.f32 %v1489_v32, %v1407_v20  ;;  %v1491_v44 = vpop.f32.mrb[30].mxu0  ;;  %v3120_v32 = vld [vmem:[#allocation31_spill] sm:$0xff] }
 0x562   :  { %v1559_v57 = vadd.f32 %v1488_v49, %v185_v33  ;;  %v1492_v29 = vadd.f32 %v1491_v44, %v1412_v52  ;;  %v1493_v56 = vpop.f32.mrb[31].mxu0 }
 0x563   :  { %v1560_v61 = vadd.f32 %v1490_v42, %v187_v43  ;;  %v1494_v37 = vadd.f32 %v1493_v56, %v1412_v52  ;;  %v1540_v25 = vpop.f32.mrb[28].mxu1 }
 0x564   :  { %v1575_v6 = vmax.f32 %v1559_v57, 0.0  ;;  %v1563_v11 = vadd.f32 %v1492_v29, %v191_v2  ;;  %v1541_v13 = vadd.f32 %v1540_v25, %v1407_v20  ;;  %v1542_v59 = vpop.f32.mrb[29].mxu1  ;;  %v3121_v57 = vld [vmem:[#allocation28_spill] sm:$0xff] }
 0x565   :  { %v1576_v31 = vmax.f32 %v1560_v61, 0.0  ;;  %v1564_v55 = vadd.f32 %v1494_v37, %v193_v5  ;;  %v1543_v18 = vadd.f32 %v1542_v59, %v1407_v20  ;;  %v1544_v23 = vpop.f32.mrb[30].mxu1  ;;  %v201_v20 = vadd.f32 %v3119_v63, %v2898_v19 }
 0x566   :  { %1591 = vst [vmem:[%s2980_s8] sm:$0xff] %v1575_v6  ;;  %v1579_v53 = vmax.f32 %v1563_v11, 0.0  ;;  %v1561_v1 = vadd.f32 %v1541_v13, %v256_v22  ;;  %v1545_v14 = vadd.f32 %v1544_v23, %v1412_v52  ;;  %v1546_v47 = vpop.f32.mrb[31].mxu1  ;;  %v266_v39 = vadd.f32 %v3121_v57, %v2896_v28 }
 0x567   :  { %1592 = vst [vmem:[%s2980_s8 + $0x8] sm:$0xff] %v1576_v31  ;;  %v1580_v30 = vmax.f32 %v1564_v55, 0.0  ;;  %v1562_v38 = vadd.f32 %v1543_v18, %v258_v26  ;;  %v1547_v16 = vadd.f32 %v1546_v47, %v1412_v52  ;;  %v1497_v40 = vpop.f32.mrb[32].mxu0  ;;  %v203_v52 = vadd.f32 %v3120_v32, %v2898_v19 }
 0x568   :  { %1595 = vst [vmem:[%s2980_s8 + $0x20] sm:$0xff] %v1579_v53  ;;  %v1577_v46 = vmax.f32 %v1561_v1, 0.0  ;;  %v1565_v3 = vadd.f32 %v1545_v14, %v262_v24  ;;  %v1498_v34 = vadd.f32 %v1497_v40, %v1417_v21  ;;  %v1499_v7 = vpop.f32.mrb[33].mxu0  ;;  %v268_v5 = vadd.f32 %v3122_v62, %v2896_v28  ;;  %v3124_v28 = vld [vmem:[#allocation33_spill] sm:$0xff] }
 0x569   :  { %1596 = vst [vmem:[%s2980_s8 + $0x28] sm:$0xff] %v1580_v30  ;;  %v1578_v9 = vmax.f32 %v1562_v38, 0.0  ;;  %v1566_v10 = vadd.f32 %v1547_v16, %v264_v15  ;;  %v1500_v48 = vadd.f32 %v1499_v7, %v1417_v21  ;;  %v1501_v4 = vpop.f32.mrb[34].mxu0  ;;  %v272_v22 = vadd.f32 %v3123_v17, %v2898_v19 }
 0x56a   :  { %1593 = vst [vmem:[%s2980_s8 + $0x10] sm:$0xff] %v1577_v46  ;;  %v1581_v45 = vmax.f32 %v1565_v3, 0.0  ;;  %v1567_v12 = vadd.f32 %v1498_v34, %v195_v27  ;;  %v1502_v0 = vadd.f32 %v1501_v4, %v1422_v36  ;;  %v1503_v35 = vpop.f32.mrb[35].mxu0  ;;  %v274_v8 = vadd.f32 %v3124_v28, %v2898_v19 }
 0x56b   :  { %1594 = vst [vmem:[%s2980_s8 + $0x18] sm:$0xff] %v1578_v9  ;;  %v1582_v33 = vmax.f32 %v1566_v10, 0.0  ;;  %v1568_v49 = vadd.f32 %v1500_v48, %v197_v50  ;;  %v1504_v54 = vadd.f32 %v1503_v35, %v1422_v36  ;;  %v1550_v43 = vpop.f32.mrb[32].mxu1 }
 0x56c   :  { %1597 = vst [vmem:[%s2980_s8 + $0x30] sm:$0xff] %v1581_v45  ;;  %v1583_v42 = vmax.f32 %v1567_v12, 0.0  ;;  %v1571_v44 = vadd.f32 %v1502_v0, %v201_v20  ;;  %v1551_v2 = vadd.f32 %v1550_v43, %v1417_v21  ;;  %v1552_v29 = vpop.f32.mrb[33].mxu1 }
 0x56d   :  { %1598 = vst [vmem:[%s2980_s8 + $0x38] sm:$0xff] %v1582_v33  ;;  %v1584_v56 = vmax.f32 %v1568_v49, 0.0  ;;  %v1572_v61 = vadd.f32 %v1504_v54, %v203_v52  ;;  %v1553_v37 = vadd.f32 %v1552_v29, %v1417_v21  ;;  %v1554_v25 = vpop.f32.mrb[34].mxu1 }
 0x56e   :  { %1599 = vst [vmem:[%s2980_s8 + $0x40] sm:$0xff] %v1583_v42  ;;  %v1587_v6 = vmax.f32 %v1571_v44, 0.0  ;;  %v1569_v11 = vadd.f32 %v1551_v2, %v266_v39  ;;  %v1555_v13 = vadd.f32 %v1554_v25, %v1422_v36  ;;  %v1556_v59 = vpop.f32.mrb[35].mxu1 }
 0x56f   :  { %1600 = vst [vmem:[%s2980_s8 + $0x48] sm:$0xff] %v1584_v56  ;;  %v1588_v31 = vmax.f32 %v1572_v61, 0.0  ;;  %v1570_v55 = vadd.f32 %v1553_v37, %v268_v5  ;;  %v1557_v26 = vadd.f32 %v1556_v59, %v1422_v36 }
 0x570   :  { %1603 = vst [vmem:[%s2980_s8 + $0x60] sm:$0xff] %v1587_v6  ;;  %v1585_v18 = vmax.f32 %v1569_v11, 0.0  ;;  %v1573_v23 = vadd.f32 %v1555_v13, %v272_v22 }
 0x571   :  { %1604 = vst [vmem:[%s2980_s8 + $0x68] sm:$0xff] %v1588_v31  ;;  %v1586_v53 = vmax.f32 %v1570_v55, 0.0  ;;  %v1574_v1 = vadd.f32 %v1557_v26, %v274_v8 }
 0x572   :  { %1601 = vst [vmem:[%s2980_s8 + $0x50] sm:$0xff] %v1585_v18  ;;  %v1589_v60 = vmax.f32 %v1573_v23, 0.0 }
 0x573   :  { %1602 = vst [vmem:[%s2980_s8 + $0x58] sm:$0xff] %v1586_v53  ;;  %v1590_v19 = vmax.f32 %v1574_v1, 0.0 }
 0x574   :  { %1605 = vst [vmem:[%s2980_s8 + $0x70] sm:$0xff] %v1589_v60 }
 0x575   :  { %1606 = vst [vmem:[%s2980_s8 + $0x78] sm:$0xff] %v1590_v19 }

</bundles_post_ra>
